<compile_context>
chip_gen: v5e
topology: v5e:2x2
jax: 0.10.0
libtpu: 0.0.40
codegen_flags: <defaults>
</compile_context>

<pallas_src>
import jax
import jax.numpy as jnp
from jax.experimental import pallas as pl
from jax.experimental.pallas import tpu as pltpu


def _scale_mul_kernel(s_ref, x_ref, o_ref):
    # s_ref: (1, c_blk, 1) per-channel scale
    # x_ref / o_ref: (1, c_blk, HW) activation tile (channels on sublanes,
    # spatial on lanes — the module's native NCHW-contiguous layout).
    o_ref[...] = x_ref[...] * s_ref[...]


def _pick_c_block(c, hw, itemsize, *, vmem_budget=16 << 20):
    """Channel (sublane) tile size.

    Use the full C extent when the whole (C, H*W) slab is small — one grid
    step per batch element, no padded tail, no per-step overhead. Only if the
    double-buffered in+out footprint (~4 * c_blk * hw * itemsize bytes) would
    blow a conservative VMEM budget do we tile C in multiples of 8.
    """
    full_bytes = 4 * c * hw * itemsize
    if full_bytes <= vmem_budget:
        return c
    c_blk = max(8, (vmem_budget // (4 * hw * itemsize)) // 8 * 8)
    return min(c_blk, c)


def channel_scale_mul(x713, x708):
    """Computes x713 * x708 where x713 is (N, C, 1, 1) and x708 is (N, C, H, W)."""
    n, c, h, w = x708.shape
    assert x713.shape == (n, c, 1, 1)
    hw = h * w
    dtype = x708.dtype

    # Zero-copy reshapes of contiguous arrays: no transposes, no extra HBM
    # traffic, no extra kernel launches.
    x_rows = x708.reshape(n, c, hw)
    s_rows = x713.reshape(n, c, 1)

    c_blk = _pick_c_block(c, hw, jnp.dtype(dtype).itemsize)
    # (8, 128) BlockSpec rule: sublane block is a multiple of 8 or the full C
    # extent; the lane block is always the full H*W extent.
    assert c_blk == c or c_blk % 8 == 0
    grid = (n, pl.cdiv(c, c_blk))  # (1, 1) for the module's shape

    out_rows = pl.pallas_call(
        _scale_mul_kernel,
        out_shape=jax.ShapeDtypeStruct((n, c, hw), dtype),
        grid=grid,
        in_specs=[
            pl.BlockSpec((1, c_blk, 1), lambda b, ci: (b, ci, 0)),
            pl.BlockSpec((1, c_blk, hw), lambda b, ci: (b, ci, 0)),
        ],
        out_specs=pl.BlockSpec((1, c_blk, hw), lambda b, ci: (b, ci, 0)),
        compiler_params=pltpu.CompilerParams(
            # Every (b, ci) block is independent; batch-axis "parallel" lets
            # larger N shard across v7x's two TensorCores cleanly.
            dimension_semantics=("parallel", "parallel"),
        ),
    )(s_rows, x_rows)

    # Free reshape back to the module's NCHW shape.
    return out_rows.reshape(n, c, h, w)


if __name__ == "__main__":
    key = jax.random.PRNGKey(0)
    k1, k2 = jax.random.split(key)

    # Shapes from the module's forward: (1, 1824, 1, 1) * (1, 1824, 7, 7)
    x708 = jax.random.normal(k1, (1, 1824, 7, 7), dtype=jnp.float32)
    x713 = jax.random.normal(k2, (1, 1824, 1, 1), dtype=jnp.float32)

    out = jax.block_until_ready(channel_scale_mul(x713, x708))

    # Reference with the same broadcasting semantics as torch's operator.mul
    ref = x713 * x708
    assert out.shape == ref.shape
    assert jnp.allclose(out, ref, atol=1e-6, rtol=1e-6)

    print("KERNEL_OK")
</pallas_src>

<mosaic_0001>
module attributes {stable_mosaic.version = 11 : i64} {
  func.func @_scale_mul_kernel(%arg0: i32, %arg1: i32, %arg2: memref<1x1824x1xf32, #tpu.memory_space<vmem>>, %arg3: memref<1x1824x49xf32, #tpu.memory_space<vmem>>, %arg4: memref<1x1824x49xf32, #tpu.memory_space<vmem>>) attributes {dimension_semantics = [#tpu.dimension_semantics<parallel>, #tpu.dimension_semantics<parallel>], iteration_bounds = array<i64: 1, 1>, scalar_prefetch = 0 : i64, scratch_operands = 0 : i64, tpu.core_type = #tpu.core_type<tc>, window_params = [{transform_indices = @transform_0, window_bounds = array<i64: 1, 1824, 1>}, {transform_indices = @transform_1, window_bounds = array<i64: 1, 1824, 49>}, {transform_indices = @transform_2, window_bounds = array<i64: 1, 1824, 49>}]} {
    %c0 = arith.constant 0 : index
    %c0_0 = arith.constant 0 : index
    %c0_1 = arith.constant 0 : index
    %0 = vector.load %arg3[%c0, %c0_0, %c0_1] : memref<1x1824x49xf32, #tpu.memory_space<vmem>>, vector<1x1824x49xf32>
    %c0_2 = arith.constant 0 : index
    %c0_3 = arith.constant 0 : index
    %c0_4 = arith.constant 0 : index
    %1 = vector.load %arg2[%c0_2, %c0_3, %c0_4] : memref<1x1824x1xf32, #tpu.memory_space<vmem>>, vector<1x1824x1xf32>
    %2 = vector.broadcast %1 : vector<1x1824x1xf32> to vector<1x1824x49xf32>
    %3 = arith.mulf %0, %2 : vector<1x1824x49xf32>
    %c0_5 = arith.constant 0 : index
    %c0_6 = arith.constant 0 : index
    %c0_7 = arith.constant 0 : index
    %4 = vector.load %arg4[%c0_5, %c0_6, %c0_7] : memref<1x1824x49xf32, #tpu.memory_space<vmem>>, vector<1x1824x49xf32>
    tpu.vector_store %arg4[%c0_5, %c0_6, %c0_7], %3 {strides = array<i32>} : memref<1x1824x49xf32, #tpu.memory_space<vmem>>, vector<1x1824x49xf32>,
    return
  }
  func.func @transform_0(%arg0: i32, %arg1: i32) -> (i32, i32, i32) {
    %c0_i32 = arith.constant 0 : i32
    %c0_i32_0 = arith.constant 0 : i32
    return %arg0, %arg1, %c0_i32 : i32, i32, i32
  }
  func.func @transform_1(%arg0: i32, %arg1: i32) -> (i32, i32, i32) {
    %c0_i32 = arith.constant 0 : i32
    %c0_i32_0 = arith.constant 0 : i32
    return %arg0, %arg1, %c0_i32 : i32, i32, i32
  }
  func.func @transform_2(%arg0: i32, %arg1: i32) -> (i32, i32, i32) {
    %c0_i32 = arith.constant 0 : i32
    %c0_i32_0 = arith.constant 0 : i32
    return %arg0, %arg1, %c0_i32 : i32, i32, i32
  }
}

</mosaic_0001>

<bundles_post_ra>
// kernel: tpu_custom_call.1
= control target key start
LH: loop header
LB: loop body
LE: loop exit
PB: predicated region body
PF: predicated region fallthrough
CT: control target
= control target key end

     0   :  { %v2072_v0 = vmov 0   ;;  %vm1835_vm0 = vcmask 400384   ;;  %s4368_s0 = inlined_call_operand.vmem [shape: f32[1,1824,1], index: 0, kind: input, shape index: {}]   ;;  %s4369_s1 = inlined_call_operand.vmem [shape: f32[1,1824,49], index: 1, kind: input, shape index: {}]   ;;  %s4370_s2 = inlined_call_operand.vmem [shape: f32[1,1824,49], index: 2, kind: output, shape index: {}]  }
   0x1   :  { %2071 = vset.pattern.permute.xlu2 %v2072_v0  ;;  %2070 = vset.pattern.permute.xlu1 %v2072_v0  ;;  %v243_v1 = vld [vmem:[%s4368_s0 + $0x20] sm:$0xff]  ;;  %v241_v2 = vld [vmem:[%s4368_s0 + $0x10] sm:$0xff]  ;;  %v244_v4 = vld [vmem:[%s4368_s0 + $0x28] sm:$0xff] }
   0x2   :  { %v239_v3 = vld [vmem:[%s4368_s0] sm:$0xff]  ;;  %2069 = vset.pattern.permute.xlu0 %v2072_v0  ;;  %489 = vperm.xlu2 %2071, %v243_v1   ;;  %v242_v5 = vld [vmem:[%s4368_s0 + $0x18] sm:$0xff]  ;;  %v240_v6 = vld [vmem:[%s4368_s0 + $0x8] sm:$0xff] }
   0x3   :  { %479 = vperm.xlu1 %2070, %v241_v2   ;;  %469 = vperm.xlu0 %2069, %v239_v3   ;;  %v247_v7 = vld [vmem:[%s4368_s0 + $0x40] sm:$0xff]  ;;  %v246_v8 = vld [vmem:[%s4368_s0 + $0x38] sm:$0xff]  ;;  %v245_v9 = vld [vmem:[%s4368_s0 + $0x30] sm:$0xff] }
   0x4   :  { %v250_v10 = vld [vmem:[%s4368_s0 + $0x58] sm:$0xff]  ;;  %v249_v11 = vld [vmem:[%s4368_s0 + $0x50] sm:$0xff]  ;;  %v248_v12 = vld [vmem:[%s4368_s0 + $0x48] sm:$0xff] }
   0x5   :  { %v253_v13 = vld [vmem:[%s4368_s0 + $0x70] sm:$0xff]  ;;  %v252_v14 = vld [vmem:[%s4368_s0 + $0x68] sm:$0xff]  ;;  %v251_v15 = vld [vmem:[%s4368_s0 + $0x60] sm:$0xff] }
   0x6   :  { %v256_v16 = vld [vmem:[%s4368_s0 + $0x88] sm:$0xff]  ;;  %v255_v17 = vld [vmem:[%s4368_s0 + $0x80] sm:$0xff]  ;;  %v254_v18 = vld [vmem:[%s4368_s0 + $0x78] sm:$0xff] }
   0x7   :  { %v259_v19 = vld [vmem:[%s4368_s0 + $0xa0] sm:$0xff]  ;;  %v258_v20 = vld [vmem:[%s4368_s0 + $0x98] sm:$0xff]  ;;  %v257_v21 = vld [vmem:[%s4368_s0 + $0x90] sm:$0xff] }
   0x8   :  { %v262_v22 = vld [vmem:[%s4368_s0 + $0xb8] sm:$0xff]  ;;  %v261_v23 = vld [vmem:[%s4368_s0 + $0xb0] sm:$0xff]  ;;  %v260_v24 = vld [vmem:[%s4368_s0 + $0xa8] sm:$0xff] }
   0x9   :  { %v265_v25 = vld [vmem:[%s4368_s0 + $0xd0] sm:$0xff]  ;;  %v264_v26 = vld [vmem:[%s4368_s0 + $0xc8] sm:$0xff]  ;;  %v263_v27 = vld [vmem:[%s4368_s0 + $0xc0] sm:$0xff] }
   0xa   :  { %494 = vperm.xlu2 %2071, %v244_v4   ;;  %v268_v28 = vld [vmem:[%s4368_s0 + $0xe8] sm:$0xff]  ;;  %v267_v29 = vld [vmem:[%s4368_s0 + $0xe0] sm:$0xff]  ;;  %v266_v30 = vld [vmem:[%s4368_s0 + $0xd8] sm:$0xff] }
   0xb   :  { %484 = vperm.xlu1 %2070, %v242_v5   ;;  %474 = vperm.xlu0 %2069, %v240_v6   ;;  %v271_v31 = vld [vmem:[%s4368_s0 + $0x100] sm:$0xff]  ;;  %v270_v32 = vld [vmem:[%s4368_s0 + $0xf8] sm:$0xff]  ;;  %v269_v33 = vld [vmem:[%s4368_s0 + $0xf0] sm:$0xff] }
   0xc   :  { %v274_v34 = vld [vmem:[%s4368_s0 + $0x118] sm:$0xff]  ;;  %v273_v35 = vld [vmem:[%s4368_s0 + $0x110] sm:$0xff]  ;;  %v272_v36 = vld [vmem:[%s4368_s0 + $0x108] sm:$0xff] }
   0xd   :  { %v15_v37 = vld [vmem:[%s4369_s1 + $0x20] sm:$0xff]  ;;  %v277_v40 = vld [vmem:[%s4368_s0 + $0x130] sm:$0xff]  ;;  %v276_v41 = vld [vmem:[%s4368_s0 + $0x128] sm:$0xff] }
   0xe   :  { %v275_v42 = vld [vmem:[%s4368_s0 + $0x120] sm:$0xff]  ;;  %v16_v43 = vld [vmem:[%s4369_s1 + $0x28] sm:$0xff]  ;;  %v278_v48 = vld [vmem:[%s4368_s0 + $0x138] sm:$0xff] }
   0xf   :  { %v280_v46 = vld [vmem:[%s4368_s0 + $0x148] sm:$0xff]  ;;  %v279_v47 = vld [vmem:[%s4368_s0 + $0x140] sm:$0xff]  ;;  %v282_v53 = vld [vmem:[%s4368_s0 + $0x158] sm:$0xff] }
  0x10   :  { %v19_v49 = vld [vmem:[%s4369_s1 + $0x40] sm:$0xff]  ;;  %v281_v54 = vld [vmem:[%s4368_s0 + $0x150] sm:$0xff]  ;;  %v22_v55 = vld [vmem:[%s4369_s1 + $0x58] sm:$0xff] }
  0x11   :  { %v283_v52 = vld [vmem:[%s4368_s0 + $0x160] sm:$0xff]  ;;  %v13_v56 = vld [vmem:[%s4369_s1 + $0x10] sm:$0xff]  ;;  %v286_v0 = vld [vmem:[%s4368_s0 + $0x178] sm:$0xff] }
  0x12   :  { %509 = vperm.xlu2 %2071, %v247_v7   ;;  %v11_v57 = vld [vmem:[%s4369_s1] sm:$0xff]  ;;  %v285_v1 = vld [vmem:[%s4368_s0 + $0x170] sm:$0xff]  ;;  %v284_v2 = vld [vmem:[%s4368_s0 + $0x168] sm:$0xff] }
  0x13   :  { %504 = vperm.xlu1 %2070, %v246_v8   ;;  %499 = vperm.xlu0 %2069, %v245_v9   ;;  %v25_v3 = vld [vmem:[%s4369_s1 + $0x70] sm:$0xff]  ;;  %v14_v4 = vld [vmem:[%s4369_s1 + $0x18] sm:$0xff]  ;;  %v12_v5 = vld [vmem:[%s4369_s1 + $0x8] sm:$0xff] }
  0x1a   :  { %524 = vperm.xlu2 %2071, %v250_v10  }
  0x1b   :  { %519 = vperm.xlu1 %2070, %v249_v11   ;;  %514 = vperm.xlu0 %2069, %v248_v12   ;;  %v289_v12 = vld [vmem:[%s4368_s0 + $0x190] sm:$0xff] }
  0x22   :  { %539 = vperm.xlu2 %2071, %v253_v13   ;;  %v288_v13 = vld [vmem:[%s4368_s0 + $0x188] sm:$0xff] }
  0x23   :  { %534 = vperm.xlu1 %2070, %v252_v14   ;;  %529 = vperm.xlu0 %2069, %v251_v15   ;;  %v287_v14 = vld [vmem:[%s4368_s0 + $0x180] sm:$0xff]  ;;  %v28_v15 = vld [vmem:[%s4369_s1 + $0x88] sm:$0xff] }
  0x2a   :  { %554 = vperm.xlu2 %2071, %v256_v16   ;;  %v18_v16 = vld [vmem:[%s4369_s1 + $0x38] sm:$0xff] }
  0x2b   :  { %549 = vperm.xlu1 %2070, %v255_v17   ;;  %544 = vperm.xlu0 %2069, %v254_v18   ;;  %v17_v17 = vld [vmem:[%s4369_s1 + $0x30] sm:$0xff] }
  0x32   :  { %569 = vperm.xlu2 %2071, %v259_v19  }
  0x33   :  { %564 = vperm.xlu1 %2070, %v258_v20   ;;  %559 = vperm.xlu0 %2069, %v257_v21  }
  0x3a   :  { %584 = vperm.xlu2 %2071, %v262_v22  }
  0x3b   :  { %579 = vperm.xlu1 %2070, %v261_v23   ;;  %574 = vperm.xlu0 %2069, %v260_v24   ;;  %v292_v24 = vld [vmem:[%s4368_s0 + $0x1a8] sm:$0xff] }
  0x42   :  { %599 = vperm.xlu2 %2071, %v265_v25   ;;  %v291_v25 = vld [vmem:[%s4368_s0 + $0x1a0] sm:$0xff] }
  0x43   :  { %594 = vperm.xlu1 %2070, %v264_v26   ;;  %589 = vperm.xlu0 %2069, %v263_v27   ;;  %v290_v26 = vld [vmem:[%s4368_s0 + $0x198] sm:$0xff]  ;;  %v31_v27 = vld [vmem:[%s4369_s1 + $0xa0] sm:$0xff] }
  0x4a   :  { %614 = vperm.xlu2 %2071, %v268_v28   ;;  %v21_v28 = vld [vmem:[%s4369_s1 + $0x50] sm:$0xff] }
  0x4b   :  { %609 = vperm.xlu1 %2070, %v267_v29   ;;  %604 = vperm.xlu0 %2069, %v266_v30   ;;  %v20_v29 = vld [vmem:[%s4369_s1 + $0x48] sm:$0xff] }
  0x52   :  { %629 = vperm.xlu2 %2071, %v271_v31  }
  0x53   :  { %624 = vperm.xlu1 %2070, %v270_v32   ;;  %619 = vperm.xlu0 %2069, %v269_v33  }
  0x5a   :  { %644 = vperm.xlu2 %2071, %v274_v34  }
  0x5b   :  { %639 = vperm.xlu1 %2070, %v273_v35   ;;  %634 = vperm.xlu0 %2069, %v272_v36   ;;  %v295_v36 = vld [vmem:[%s4368_s0 + $0x1c0] sm:$0xff] }
  0x5c   :  { %v490_v38 = vpop.permute.xlu2 %489 }
  0x5d   :  { %v1611_v39 = vmul.f32 %v490_v38, %v15_v37  ;;  %v294_v37 = vld [vmem:[%s4368_s0 + $0x1b8] sm:$0xff]  ;;  %v293_v38 = vld [vmem:[%s4368_s0 + $0x1b0] sm:$0xff] }
  0x5f   :  { %1840 = vst.msk [vmem:[%s4370_s2 + $0x20] sm:$0xff] %vm1835_vm0, %v1611_v39  ;;  %v34_v39 = vld [vmem:[%s4369_s1 + $0xb8] sm:$0xff] }
  0x62   :  { %659 = vperm.xlu2 %2071, %v277_v40   ;;  %v24_v40 = vld [vmem:[%s4369_s1 + $0x68] sm:$0xff] }
  0x63   :  { %654 = vperm.xlu1 %2070, %v276_v41   ;;  %649 = vperm.xlu0 %2069, %v275_v42   ;;  %v23_v41 = vld [vmem:[%s4369_s1 + $0x60] sm:$0xff] }
  0x64   :  { %v495_v44 = vpop.permute.xlu2 %494 }
  0x65   :  { %v1612_v45 = vmul.f32 %v495_v44, %v16_v43 }
  0x67   :  { %1841 = vst.msk [vmem:[%s4370_s2 + $0x28] sm:$0xff] %vm1835_vm0, %v1612_v45 }
  0x6a   :  { %674 = vperm.xlu2 %2071, %v280_v46  }
  0x6b   :  { %669 = vperm.xlu1 %2070, %v279_v47   ;;  %664 = vperm.xlu0 %2069, %v278_v48   ;;  %v298_v48 = vld [vmem:[%s4368_s0 + $0x1d8] sm:$0xff] }
  0x6c   :  { %v510_v50 = vpop.permute.xlu2 %509 }
  0x6d   :  { %v1615_v51 = vmul.f32 %v510_v50, %v19_v49  ;;  %v297_v49 = vld [vmem:[%s4368_s0 + $0x1d0] sm:$0xff]  ;;  %v296_v50 = vld [vmem:[%s4368_s0 + $0x1c8] sm:$0xff] }
  0x6f   :  { %1844 = vst.msk [vmem:[%s4370_s2 + $0x40] sm:$0xff] %vm1835_vm0, %v1615_v51  ;;  %v37_v51 = vld [vmem:[%s4369_s1 + $0xd0] sm:$0xff] }
  0x72   :  { %689 = vperm.xlu2 %2071, %v283_v52   ;;  %v27_v52 = vld [vmem:[%s4369_s1 + $0x80] sm:$0xff] }
  0x73   :  { %684 = vperm.xlu1 %2070, %v282_v53   ;;  %679 = vperm.xlu0 %2069, %v281_v54   ;;  %v26_v53 = vld [vmem:[%s4369_s1 + $0x78] sm:$0xff] }
  0x74   :  { %v525_v58 = vpop.permute.xlu2 %524 }
  0x75   :  { %v1618_v59 = vmul.f32 %v525_v58, %v22_v55  ;;  %v480_v60 = vpop.permute.xlu1 %479  ;;  %v470_v61 = vpop.permute.xlu0 %469 }
  0x76   :  { %v1609_v62 = vmul.f32 %v480_v60, %v13_v56  ;;  %v1607_v63 = vmul.f32 %v470_v61, %v11_v57  ;;  %v301_v60 = vld [vmem:[%s4368_s0 + $0x1f0] sm:$0xff]  ;;  %v300_v61 = vld [vmem:[%s4368_s0 + $0x1e8] sm:$0xff] }
  0x77   :  { %1847 = vst.msk [vmem:[%s4370_s2 + $0x58] sm:$0xff] %vm1835_vm0, %v1618_v59 }
  0x78   :  { %1838 = vst.msk [vmem:[%s4370_s2 + $0x10] sm:$0xff] %vm1835_vm0, %v1609_v62  ;;  %v299_v62 = vld [vmem:[%s4368_s0 + $0x1e0] sm:$0xff] }
  0x79   :  { %1836 = vst.msk [vmem:[%s4370_s2] sm:$0xff] %vm1835_vm0, %v1607_v63  ;;  %v40_v63 = vld [vmem:[%s4369_s1 + $0xe8] sm:$0xff] }
  0x7a   :  { %704 = vperm.xlu2 %2071, %v286_v0   ;;  %v30_v0 = vld [vmem:[%s4369_s1 + $0x98] sm:$0xff] }
  0x7b   :  { %699 = vperm.xlu1 %2070, %v285_v1   ;;  %694 = vperm.xlu0 %2069, %v284_v2   ;;  %v29_v1 = vld [vmem:[%s4369_s1 + $0x90] sm:$0xff] }
  0x7c   :  { %v540_v6 = vpop.permute.xlu2 %539 }
  0x7d   :  { %v1621_v7 = vmul.f32 %v540_v6, %v25_v3  ;;  %v485_v8 = vpop.permute.xlu1 %484  ;;  %v475_v9 = vpop.permute.xlu0 %474 }
  0x7e   :  { %v1610_v10 = vmul.f32 %v485_v8, %v14_v4  ;;  %v1608_v11 = vmul.f32 %v475_v9, %v12_v5  ;;  %v304_v8 = vld [vmem:[%s4368_s0 + $0x208] sm:$0xff]  ;;  %v303_v9 = vld [vmem:[%s4368_s0 + $0x200] sm:$0xff] }
  0x7f   :  { %1850 = vst.msk [vmem:[%s4370_s2 + $0x70] sm:$0xff] %vm1835_vm0, %v1621_v7 }
  0x80   :  { %1839 = vst.msk [vmem:[%s4370_s2 + $0x18] sm:$0xff] %vm1835_vm0, %v1610_v10  ;;  %v302_v10 = vld [vmem:[%s4368_s0 + $0x1f8] sm:$0xff] }
  0x81   :  { %1837 = vst.msk [vmem:[%s4370_s2 + $0x8] sm:$0xff] %vm1835_vm0, %v1608_v11  ;;  %v43_v11 = vld [vmem:[%s4369_s1 + $0x100] sm:$0xff] }
  0x82   :  { %719 = vperm.xlu2 %2071, %v289_v12   ;;  %v33_v12 = vld [vmem:[%s4369_s1 + $0xb0] sm:$0xff] }
  0x83   :  { %714 = vperm.xlu1 %2070, %v288_v13   ;;  %709 = vperm.xlu0 %2069, %v287_v14   ;;  %v32_v13 = vld [vmem:[%s4369_s1 + $0xa8] sm:$0xff] }
  0x84   :  { %v555_v18 = vpop.permute.xlu2 %554 }
  0x85   :  { %v1624_v19 = vmul.f32 %v555_v18, %v28_v15  ;;  %v505_v20 = vpop.permute.xlu1 %504  ;;  %v500_v21 = vpop.permute.xlu0 %499 }
  0x86   :  { %v1614_v22 = vmul.f32 %v505_v20, %v18_v16  ;;  %v1613_v23 = vmul.f32 %v500_v21, %v17_v17  ;;  %v307_v20 = vld [vmem:[%s4368_s0 + $0x220] sm:$0xff]  ;;  %v306_v21 = vld [vmem:[%s4368_s0 + $0x218] sm:$0xff] }
  0x87   :  { %1853 = vst.msk [vmem:[%s4370_s2 + $0x88] sm:$0xff] %vm1835_vm0, %v1624_v19 }
  0x88   :  { %1843 = vst.msk [vmem:[%s4370_s2 + $0x38] sm:$0xff] %vm1835_vm0, %v1614_v22  ;;  %v305_v22 = vld [vmem:[%s4368_s0 + $0x210] sm:$0xff] }
  0x89   :  { %1842 = vst.msk [vmem:[%s4370_s2 + $0x30] sm:$0xff] %vm1835_vm0, %v1613_v23  ;;  %v46_v23 = vld [vmem:[%s4369_s1 + $0x118] sm:$0xff] }
  0x8a   :  { %734 = vperm.xlu2 %2071, %v292_v24   ;;  %v36_v24 = vld [vmem:[%s4369_s1 + $0xc8] sm:$0xff] }
  0x8b   :  { %729 = vperm.xlu1 %2070, %v291_v25   ;;  %724 = vperm.xlu0 %2069, %v290_v26   ;;  %v35_v25 = vld [vmem:[%s4369_s1 + $0xc0] sm:$0xff] }
  0x8c   :  { %v570_v30 = vpop.permute.xlu2 %569 }
  0x8d   :  { %v1627_v31 = vmul.f32 %v570_v30, %v31_v27  ;;  %v520_v32 = vpop.permute.xlu1 %519  ;;  %v515_v33 = vpop.permute.xlu0 %514 }
  0x8e   :  { %v1617_v34 = vmul.f32 %v520_v32, %v21_v28  ;;  %v1616_v35 = vmul.f32 %v515_v33, %v20_v29  ;;  %v310_v32 = vld [vmem:[%s4368_s0 + $0x238] sm:$0xff]  ;;  %v309_v33 = vld [vmem:[%s4368_s0 + $0x230] sm:$0xff] }
  0x8f   :  { %1856 = vst.msk [vmem:[%s4370_s2 + $0xa0] sm:$0xff] %vm1835_vm0, %v1627_v31 }
  0x90   :  { %1846 = vst.msk [vmem:[%s4370_s2 + $0x50] sm:$0xff] %vm1835_vm0, %v1617_v34  ;;  %v308_v34 = vld [vmem:[%s4368_s0 + $0x228] sm:$0xff] }
  0x91   :  { %1845 = vst.msk [vmem:[%s4370_s2 + $0x48] sm:$0xff] %vm1835_vm0, %v1616_v35  ;;  %v49_v35 = vld [vmem:[%s4369_s1 + $0x130] sm:$0xff] }
  0x92   :  { %749 = vperm.xlu2 %2071, %v295_v36   ;;  %v39_v36 = vld [vmem:[%s4369_s1 + $0xe0] sm:$0xff] }
  0x93   :  { %744 = vperm.xlu1 %2070, %v294_v37   ;;  %739 = vperm.xlu0 %2069, %v293_v38   ;;  %v38_v37 = vld [vmem:[%s4369_s1 + $0xd8] sm:$0xff] }
  0x94   :  { %v585_v42 = vpop.permute.xlu2 %584 }
  0x95   :  { %v1630_v43 = vmul.f32 %v585_v42, %v34_v39  ;;  %v535_v44 = vpop.permute.xlu1 %534  ;;  %v530_v45 = vpop.permute.xlu0 %529 }
  0x96   :  { %v1620_v46 = vmul.f32 %v535_v44, %v24_v40  ;;  %v1619_v47 = vmul.f32 %v530_v45, %v23_v41  ;;  %v313_v44 = vld [vmem:[%s4368_s0 + $0x250] sm:$0xff]  ;;  %v312_v45 = vld [vmem:[%s4368_s0 + $0x248] sm:$0xff] }
  0x97   :  { %1859 = vst.msk [vmem:[%s4370_s2 + $0xb8] sm:$0xff] %vm1835_vm0, %v1630_v43 }
  0x98   :  { %1849 = vst.msk [vmem:[%s4370_s2 + $0x68] sm:$0xff] %vm1835_vm0, %v1620_v46  ;;  %v311_v46 = vld [vmem:[%s4368_s0 + $0x240] sm:$0xff] }
  0x99   :  { %1848 = vst.msk [vmem:[%s4370_s2 + $0x60] sm:$0xff] %vm1835_vm0, %v1619_v47  ;;  %v52_v47 = vld [vmem:[%s4369_s1 + $0x148] sm:$0xff] }
  0x9a   :  { %764 = vperm.xlu2 %2071, %v298_v48   ;;  %v42_v48 = vld [vmem:[%s4369_s1 + $0xf8] sm:$0xff] }
  0x9b   :  { %759 = vperm.xlu1 %2070, %v297_v49   ;;  %754 = vperm.xlu0 %2069, %v296_v50   ;;  %v41_v49 = vld [vmem:[%s4369_s1 + $0xf0] sm:$0xff] }
  0x9c   :  { %v600_v54 = vpop.permute.xlu2 %599 }
  0x9d   :  { %v1633_v55 = vmul.f32 %v600_v54, %v37_v51  ;;  %v550_v56 = vpop.permute.xlu1 %549  ;;  %v545_v57 = vpop.permute.xlu0 %544 }
  0x9e   :  { %v1623_v58 = vmul.f32 %v550_v56, %v27_v52  ;;  %v1622_v59 = vmul.f32 %v545_v57, %v26_v53  ;;  %v316_v56 = vld [vmem:[%s4368_s0 + $0x268] sm:$0xff]  ;;  %v315_v57 = vld [vmem:[%s4368_s0 + $0x260] sm:$0xff] }
  0x9f   :  { %1862 = vst.msk [vmem:[%s4370_s2 + $0xd0] sm:$0xff] %vm1835_vm0, %v1633_v55 }
  0xa0   :  { %1852 = vst.msk [vmem:[%s4370_s2 + $0x80] sm:$0xff] %vm1835_vm0, %v1623_v58  ;;  %v314_v58 = vld [vmem:[%s4368_s0 + $0x258] sm:$0xff] }
  0xa1   :  { %1851 = vst.msk [vmem:[%s4370_s2 + $0x78] sm:$0xff] %vm1835_vm0, %v1622_v59  ;;  %v55_v59 = vld [vmem:[%s4369_s1 + $0x160] sm:$0xff] }
  0xa2   :  { %779 = vperm.xlu2 %2071, %v301_v60   ;;  %v45_v60 = vld [vmem:[%s4369_s1 + $0x110] sm:$0xff] }
  0xa3   :  { %774 = vperm.xlu1 %2070, %v300_v61   ;;  %769 = vperm.xlu0 %2069, %v299_v62   ;;  %v44_v61 = vld [vmem:[%s4369_s1 + $0x108] sm:$0xff] }
  0xa4   :  { %v615_v2 = vpop.permute.xlu2 %614 }
  0xa5   :  { %v1636_v3 = vmul.f32 %v615_v2, %v40_v63  ;;  %v565_v4 = vpop.permute.xlu1 %564  ;;  %v560_v5 = vpop.permute.xlu0 %559 }
  0xa6   :  { %v1626_v6 = vmul.f32 %v565_v4, %v30_v0  ;;  %v1625_v7 = vmul.f32 %v560_v5, %v29_v1  ;;  %v319_v4 = vld [vmem:[%s4368_s0 + $0x280] sm:$0xff]  ;;  %v318_v5 = vld [vmem:[%s4368_s0 + $0x278] sm:$0xff] }
  0xa7   :  { %1865 = vst.msk [vmem:[%s4370_s2 + $0xe8] sm:$0xff] %vm1835_vm0, %v1636_v3 }
  0xa8   :  { %1855 = vst.msk [vmem:[%s4370_s2 + $0x98] sm:$0xff] %vm1835_vm0, %v1626_v6  ;;  %v317_v6 = vld [vmem:[%s4368_s0 + $0x270] sm:$0xff] }
  0xa9   :  { %1854 = vst.msk [vmem:[%s4370_s2 + $0x90] sm:$0xff] %vm1835_vm0, %v1625_v7  ;;  %v58_v7 = vld [vmem:[%s4369_s1 + $0x178] sm:$0xff] }
  0xaa   :  { %794 = vperm.xlu2 %2071, %v304_v8   ;;  %v48_v8 = vld [vmem:[%s4369_s1 + $0x128] sm:$0xff] }
  0xab   :  { %789 = vperm.xlu1 %2070, %v303_v9   ;;  %784 = vperm.xlu0 %2069, %v302_v10   ;;  %v47_v9 = vld [vmem:[%s4369_s1 + $0x120] sm:$0xff] }
  0xac   :  { %v630_v14 = vpop.permute.xlu2 %629 }
  0xad   :  { %v1639_v15 = vmul.f32 %v630_v14, %v43_v11  ;;  %v580_v16 = vpop.permute.xlu1 %579  ;;  %v575_v17 = vpop.permute.xlu0 %574 }
  0xae   :  { %v1629_v18 = vmul.f32 %v580_v16, %v33_v12  ;;  %v1628_v19 = vmul.f32 %v575_v17, %v32_v13  ;;  %v322_v16 = vld [vmem:[%s4368_s0 + $0x298] sm:$0xff]  ;;  %v321_v17 = vld [vmem:[%s4368_s0 + $0x290] sm:$0xff] }
  0xaf   :  { %1868 = vst.msk [vmem:[%s4370_s2 + $0x100] sm:$0xff] %vm1835_vm0, %v1639_v15 }
  0xb0   :  { %1858 = vst.msk [vmem:[%s4370_s2 + $0xb0] sm:$0xff] %vm1835_vm0, %v1629_v18  ;;  %v320_v18 = vld [vmem:[%s4368_s0 + $0x288] sm:$0xff] }
  0xb1   :  { %1857 = vst.msk [vmem:[%s4370_s2 + $0xa8] sm:$0xff] %vm1835_vm0, %v1628_v19  ;;  %v61_v19 = vld [vmem:[%s4369_s1 + $0x190] sm:$0xff] }
  0xb2   :  { %809 = vperm.xlu2 %2071, %v307_v20   ;;  %v51_v20 = vld [vmem:[%s4369_s1 + $0x140] sm:$0xff] }
  0xb3   :  { %804 = vperm.xlu1 %2070, %v306_v21   ;;  %799 = vperm.xlu0 %2069, %v305_v22   ;;  %v50_v21 = vld [vmem:[%s4369_s1 + $0x138] sm:$0xff] }
  0xb4   :  { %v645_v26 = vpop.permute.xlu2 %644 }
  0xb5   :  { %v1642_v27 = vmul.f32 %v645_v26, %v46_v23  ;;  %v595_v28 = vpop.permute.xlu1 %594  ;;  %v590_v29 = vpop.permute.xlu0 %589 }
  0xb6   :  { %v1632_v30 = vmul.f32 %v595_v28, %v36_v24  ;;  %v1631_v31 = vmul.f32 %v590_v29, %v35_v25  ;;  %v325_v28 = vld [vmem:[%s4368_s0 + $0x2b0] sm:$0xff]  ;;  %v324_v29 = vld [vmem:[%s4368_s0 + $0x2a8] sm:$0xff] }
  0xb7   :  { %1871 = vst.msk [vmem:[%s4370_s2 + $0x118] sm:$0xff] %vm1835_vm0, %v1642_v27 }
  0xb8   :  { %1861 = vst.msk [vmem:[%s4370_s2 + $0xc8] sm:$0xff] %vm1835_vm0, %v1632_v30  ;;  %v323_v30 = vld [vmem:[%s4368_s0 + $0x2a0] sm:$0xff] }
  0xb9   :  { %1860 = vst.msk [vmem:[%s4370_s2 + $0xc0] sm:$0xff] %vm1835_vm0, %v1631_v31  ;;  %v64_v31 = vld [vmem:[%s4369_s1 + $0x1a8] sm:$0xff] }
  0xba   :  { %824 = vperm.xlu2 %2071, %v310_v32   ;;  %v54_v32 = vld [vmem:[%s4369_s1 + $0x158] sm:$0xff] }
  0xbb   :  { %819 = vperm.xlu1 %2070, %v309_v33   ;;  %814 = vperm.xlu0 %2069, %v308_v34   ;;  %v53_v33 = vld [vmem:[%s4369_s1 + $0x150] sm:$0xff] }
  0xbc   :  { %v660_v38 = vpop.permute.xlu2 %659 }
  0xbd   :  { %v1645_v39 = vmul.f32 %v660_v38, %v49_v35  ;;  %v610_v40 = vpop.permute.xlu1 %609  ;;  %v605_v41 = vpop.permute.xlu0 %604 }
  0xbe   :  { %v1635_v42 = vmul.f32 %v610_v40, %v39_v36  ;;  %v1634_v43 = vmul.f32 %v605_v41, %v38_v37  ;;  %v328_v40 = vld [vmem:[%s4368_s0 + $0x2c8] sm:$0xff]  ;;  %v327_v41 = vld [vmem:[%s4368_s0 + $0x2c0] sm:$0xff] }
  0xbf   :  { %1874 = vst.msk [vmem:[%s4370_s2 + $0x130] sm:$0xff] %vm1835_vm0, %v1645_v39 }
  0xc0   :  { %1864 = vst.msk [vmem:[%s4370_s2 + $0xe0] sm:$0xff] %vm1835_vm0, %v1635_v42  ;;  %v326_v42 = vld [vmem:[%s4368_s0 + $0x2b8] sm:$0xff] }
  0xc1   :  { %1863 = vst.msk [vmem:[%s4370_s2 + $0xd8] sm:$0xff] %vm1835_vm0, %v1634_v43  ;;  %v67_v43 = vld [vmem:[%s4369_s1 + $0x1c0] sm:$0xff] }
  0xc2   :  { %839 = vperm.xlu2 %2071, %v313_v44   ;;  %v57_v44 = vld [vmem:[%s4369_s1 + $0x170] sm:$0xff] }
  0xc3   :  { %834 = vperm.xlu1 %2070, %v312_v45   ;;  %829 = vperm.xlu0 %2069, %v311_v46   ;;  %v56_v45 = vld [vmem:[%s4369_s1 + $0x168] sm:$0xff] }
  0xc4   :  { %v675_v50 = vpop.permute.xlu2 %674 }
  0xc5   :  { %v1648_v51 = vmul.f32 %v675_v50, %v52_v47  ;;  %v625_v52 = vpop.permute.xlu1 %624  ;;  %v620_v53 = vpop.permute.xlu0 %619 }
  0xc6   :  { %v1638_v54 = vmul.f32 %v625_v52, %v42_v48  ;;  %v1637_v55 = vmul.f32 %v620_v53, %v41_v49  ;;  %v331_v52 = vld [vmem:[%s4368_s0 + $0x2e0] sm:$0xff]  ;;  %v330_v53 = vld [vmem:[%s4368_s0 + $0x2d8] sm:$0xff] }
  0xc7   :  { %1877 = vst.msk [vmem:[%s4370_s2 + $0x148] sm:$0xff] %vm1835_vm0, %v1648_v51 }
  0xc8   :  { %1867 = vst.msk [vmem:[%s4370_s2 + $0xf8] sm:$0xff] %vm1835_vm0, %v1638_v54  ;;  %v329_v54 = vld [vmem:[%s4368_s0 + $0x2d0] sm:$0xff] }
  0xc9   :  { %1866 = vst.msk [vmem:[%s4370_s2 + $0xf0] sm:$0xff] %vm1835_vm0, %v1637_v55  ;;  %v70_v55 = vld [vmem:[%s4369_s1 + $0x1d8] sm:$0xff] }
  0xca   :  { %854 = vperm.xlu2 %2071, %v316_v56   ;;  %v60_v56 = vld [vmem:[%s4369_s1 + $0x188] sm:$0xff] }
  0xcb   :  { %849 = vperm.xlu1 %2070, %v315_v57   ;;  %844 = vperm.xlu0 %2069, %v314_v58   ;;  %v59_v57 = vld [vmem:[%s4369_s1 + $0x180] sm:$0xff] }
  0xcc   :  { %v690_v62 = vpop.permute.xlu2 %689 }
  0xcd   :  { %v1651_v63 = vmul.f32 %v690_v62, %v55_v59  ;;  %v640_v0 = vpop.permute.xlu1 %639  ;;  %v635_v1 = vpop.permute.xlu0 %634 }
  0xce   :  { %v1641_v2 = vmul.f32 %v640_v0, %v45_v60  ;;  %v1640_v3 = vmul.f32 %v635_v1, %v44_v61  ;;  %v334_v0 = vld [vmem:[%s4368_s0 + $0x2f8] sm:$0xff]  ;;  %v333_v1 = vld [vmem:[%s4368_s0 + $0x2f0] sm:$0xff] }
  0xcf   :  { %1880 = vst.msk [vmem:[%s4370_s2 + $0x160] sm:$0xff] %vm1835_vm0, %v1651_v63 }
  0xd0   :  { %1870 = vst.msk [vmem:[%s4370_s2 + $0x110] sm:$0xff] %vm1835_vm0, %v1641_v2  ;;  %v332_v2 = vld [vmem:[%s4368_s0 + $0x2e8] sm:$0xff] }
  0xd1   :  { %1869 = vst.msk [vmem:[%s4370_s2 + $0x108] sm:$0xff] %vm1835_vm0, %v1640_v3  ;;  %v73_v3 = vld [vmem:[%s4369_s1 + $0x1f0] sm:$0xff] }
  0xd2   :  { %869 = vperm.xlu2 %2071, %v319_v4   ;;  %v63_v4 = vld [vmem:[%s4369_s1 + $0x1a0] sm:$0xff] }
  0xd3   :  { %864 = vperm.xlu1 %2070, %v318_v5   ;;  %859 = vperm.xlu0 %2069, %v317_v6   ;;  %v62_v5 = vld [vmem:[%s4369_s1 + $0x198] sm:$0xff] }
  0xd4   :  { %v705_v10 = vpop.permute.xlu2 %704 }
  0xd5   :  { %v1654_v11 = vmul.f32 %v705_v10, %v58_v7  ;;  %v655_v12 = vpop.permute.xlu1 %654  ;;  %v650_v13 = vpop.permute.xlu0 %649 }
  0xd6   :  { %v1644_v14 = vmul.f32 %v655_v12, %v48_v8  ;;  %v1643_v15 = vmul.f32 %v650_v13, %v47_v9  ;;  %v337_v12 = vld [vmem:[%s4368_s0 + $0x310] sm:$0xff]  ;;  %v336_v13 = vld [vmem:[%s4368_s0 + $0x308] sm:$0xff] }
  0xd7   :  { %1883 = vst.msk [vmem:[%s4370_s2 + $0x178] sm:$0xff] %vm1835_vm0, %v1654_v11 }
  0xd8   :  { %1873 = vst.msk [vmem:[%s4370_s2 + $0x128] sm:$0xff] %vm1835_vm0, %v1644_v14  ;;  %v335_v14 = vld [vmem:[%s4368_s0 + $0x300] sm:$0xff] }
  0xd9   :  { %1872 = vst.msk [vmem:[%s4370_s2 + $0x120] sm:$0xff] %vm1835_vm0, %v1643_v15  ;;  %v76_v15 = vld [vmem:[%s4369_s1 + $0x208] sm:$0xff] }
  0xda   :  { %884 = vperm.xlu2 %2071, %v322_v16   ;;  %v66_v16 = vld [vmem:[%s4369_s1 + $0x1b8] sm:$0xff] }
  0xdb   :  { %879 = vperm.xlu1 %2070, %v321_v17   ;;  %874 = vperm.xlu0 %2069, %v320_v18   ;;  %v65_v17 = vld [vmem:[%s4369_s1 + $0x1b0] sm:$0xff] }
  0xdc   :  { %v720_v22 = vpop.permute.xlu2 %719 }
  0xdd   :  { %v1657_v23 = vmul.f32 %v720_v22, %v61_v19  ;;  %v670_v24 = vpop.permute.xlu1 %669  ;;  %v665_v25 = vpop.permute.xlu0 %664 }
  0xde   :  { %v1647_v26 = vmul.f32 %v670_v24, %v51_v20  ;;  %v1646_v27 = vmul.f32 %v665_v25, %v50_v21  ;;  %v340_v24 = vld [vmem:[%s4368_s0 + $0x328] sm:$0xff]  ;;  %v339_v25 = vld [vmem:[%s4368_s0 + $0x320] sm:$0xff] }
  0xdf   :  { %1886 = vst.msk [vmem:[%s4370_s2 + $0x190] sm:$0xff] %vm1835_vm0, %v1657_v23 }
  0xe0   :  { %1876 = vst.msk [vmem:[%s4370_s2 + $0x140] sm:$0xff] %vm1835_vm0, %v1647_v26  ;;  %v338_v26 = vld [vmem:[%s4368_s0 + $0x318] sm:$0xff] }
  0xe1   :  { %1875 = vst.msk [vmem:[%s4370_s2 + $0x138] sm:$0xff] %vm1835_vm0, %v1646_v27  ;;  %v79_v27 = vld [vmem:[%s4369_s1 + $0x220] sm:$0xff] }
  0xe2   :  { %899 = vperm.xlu2 %2071, %v325_v28   ;;  %v69_v28 = vld [vmem:[%s4369_s1 + $0x1d0] sm:$0xff] }
  0xe3   :  { %894 = vperm.xlu1 %2070, %v324_v29   ;;  %889 = vperm.xlu0 %2069, %v323_v30   ;;  %v68_v29 = vld [vmem:[%s4369_s1 + $0x1c8] sm:$0xff] }
  0xe4   :  { %v735_v34 = vpop.permute.xlu2 %734 }
  0xe5   :  { %v1660_v35 = vmul.f32 %v735_v34, %v64_v31  ;;  %v685_v36 = vpop.permute.xlu1 %684  ;;  %v680_v37 = vpop.permute.xlu0 %679 }
  0xe6   :  { %v1650_v38 = vmul.f32 %v685_v36, %v54_v32  ;;  %v1649_v39 = vmul.f32 %v680_v37, %v53_v33  ;;  %v343_v36 = vld [vmem:[%s4368_s0 + $0x340] sm:$0xff]  ;;  %v342_v37 = vld [vmem:[%s4368_s0 + $0x338] sm:$0xff] }
  0xe7   :  { %1889 = vst.msk [vmem:[%s4370_s2 + $0x1a8] sm:$0xff] %vm1835_vm0, %v1660_v35 }
  0xe8   :  { %1879 = vst.msk [vmem:[%s4370_s2 + $0x158] sm:$0xff] %vm1835_vm0, %v1650_v38  ;;  %v341_v38 = vld [vmem:[%s4368_s0 + $0x330] sm:$0xff] }
  0xe9   :  { %1878 = vst.msk [vmem:[%s4370_s2 + $0x150] sm:$0xff] %vm1835_vm0, %v1649_v39  ;;  %v82_v39 = vld [vmem:[%s4369_s1 + $0x238] sm:$0xff] }
  0xea   :  { %914 = vperm.xlu2 %2071, %v328_v40   ;;  %v72_v40 = vld [vmem:[%s4369_s1 + $0x1e8] sm:$0xff] }
  0xeb   :  { %909 = vperm.xlu1 %2070, %v327_v41   ;;  %904 = vperm.xlu0 %2069, %v326_v42   ;;  %v71_v41 = vld [vmem:[%s4369_s1 + $0x1e0] sm:$0xff] }
  0xec   :  { %v750_v46 = vpop.permute.xlu2 %749 }
  0xed   :  { %v1663_v47 = vmul.f32 %v750_v46, %v67_v43  ;;  %v700_v48 = vpop.permute.xlu1 %699  ;;  %v695_v49 = vpop.permute.xlu0 %694 }
  0xee   :  { %v1653_v50 = vmul.f32 %v700_v48, %v57_v44  ;;  %v1652_v51 = vmul.f32 %v695_v49, %v56_v45  ;;  %v346_v48 = vld [vmem:[%s4368_s0 + $0x358] sm:$0xff]  ;;  %v345_v49 = vld [vmem:[%s4368_s0 + $0x350] sm:$0xff] }
  0xef   :  { %1892 = vst.msk [vmem:[%s4370_s2 + $0x1c0] sm:$0xff] %vm1835_vm0, %v1663_v47 }
  0xf0   :  { %1882 = vst.msk [vmem:[%s4370_s2 + $0x170] sm:$0xff] %vm1835_vm0, %v1653_v50  ;;  %v344_v50 = vld [vmem:[%s4368_s0 + $0x348] sm:$0xff] }
  0xf1   :  { %1881 = vst.msk [vmem:[%s4370_s2 + $0x168] sm:$0xff] %vm1835_vm0, %v1652_v51  ;;  %v85_v51 = vld [vmem:[%s4369_s1 + $0x250] sm:$0xff] }
  0xf2   :  { %929 = vperm.xlu2 %2071, %v331_v52   ;;  %v75_v52 = vld [vmem:[%s4369_s1 + $0x200] sm:$0xff] }
  0xf3   :  { %924 = vperm.xlu1 %2070, %v330_v53   ;;  %919 = vperm.xlu0 %2069, %v329_v54   ;;  %v74_v53 = vld [vmem:[%s4369_s1 + $0x1f8] sm:$0xff] }
  0xf4   :  { %v765_v58 = vpop.permute.xlu2 %764 }
  0xf5   :  { %v1666_v59 = vmul.f32 %v765_v58, %v70_v55  ;;  %v715_v60 = vpop.permute.xlu1 %714  ;;  %v710_v61 = vpop.permute.xlu0 %709 }
  0xf6   :  { %v1656_v62 = vmul.f32 %v715_v60, %v60_v56  ;;  %v1655_v63 = vmul.f32 %v710_v61, %v59_v57  ;;  %v349_v60 = vld [vmem:[%s4368_s0 + $0x370] sm:$0xff]  ;;  %v348_v61 = vld [vmem:[%s4368_s0 + $0x368] sm:$0xff] }
  0xf7   :  { %1895 = vst.msk [vmem:[%s4370_s2 + $0x1d8] sm:$0xff] %vm1835_vm0, %v1666_v59 }
  0xf8   :  { %1885 = vst.msk [vmem:[%s4370_s2 + $0x188] sm:$0xff] %vm1835_vm0, %v1656_v62  ;;  %v347_v62 = vld [vmem:[%s4368_s0 + $0x360] sm:$0xff] }
  0xf9   :  { %1884 = vst.msk [vmem:[%s4370_s2 + $0x180] sm:$0xff] %vm1835_vm0, %v1655_v63  ;;  %v88_v63 = vld [vmem:[%s4369_s1 + $0x268] sm:$0xff] }
  0xfa   :  { %944 = vperm.xlu2 %2071, %v334_v0   ;;  %v78_v0 = vld [vmem:[%s4369_s1 + $0x218] sm:$0xff] }
  0xfb   :  { %939 = vperm.xlu1 %2070, %v333_v1   ;;  %934 = vperm.xlu0 %2069, %v332_v2   ;;  %v77_v1 = vld [vmem:[%s4369_s1 + $0x210] sm:$0xff] }
  0xfc   :  { %v780_v6 = vpop.permute.xlu2 %779 }
  0xfd   :  { %v1669_v7 = vmul.f32 %v780_v6, %v73_v3  ;;  %v730_v8 = vpop.permute.xlu1 %729  ;;  %v725_v9 = vpop.permute.xlu0 %724 }
  0xfe   :  { %v1659_v10 = vmul.f32 %v730_v8, %v63_v4  ;;  %v1658_v11 = vmul.f32 %v725_v9, %v62_v5  ;;  %v352_v8 = vld [vmem:[%s4368_s0 + $0x388] sm:$0xff]  ;;  %v351_v9 = vld [vmem:[%s4368_s0 + $0x380] sm:$0xff] }
  0xff   :  { %1898 = vst.msk [vmem:[%s4370_s2 + $0x1f0] sm:$0xff] %vm1835_vm0, %v1669_v7 }
 0x100   :  { %1888 = vst.msk [vmem:[%s4370_s2 + $0x1a0] sm:$0xff] %vm1835_vm0, %v1659_v10  ;;  %v350_v10 = vld [vmem:[%s4368_s0 + $0x378] sm:$0xff] }
 0x101   :  { %1887 = vst.msk [vmem:[%s4370_s2 + $0x198] sm:$0xff] %vm1835_vm0, %v1658_v11  ;;  %v91_v11 = vld [vmem:[%s4369_s1 + $0x280] sm:$0xff] }
 0x102   :  { %959 = vperm.xlu2 %2071, %v337_v12   ;;  %v81_v12 = vld [vmem:[%s4369_s1 + $0x230] sm:$0xff] }
 0x103   :  { %954 = vperm.xlu1 %2070, %v336_v13   ;;  %949 = vperm.xlu0 %2069, %v335_v14   ;;  %v80_v13 = vld [vmem:[%s4369_s1 + $0x228] sm:$0xff] }
 0x104   :  { %v795_v18 = vpop.permute.xlu2 %794 }
 0x105   :  { %v1672_v19 = vmul.f32 %v795_v18, %v76_v15  ;;  %v745_v20 = vpop.permute.xlu1 %744  ;;  %v740_v21 = vpop.permute.xlu0 %739 }
 0x106   :  { %v1662_v22 = vmul.f32 %v745_v20, %v66_v16  ;;  %v1661_v23 = vmul.f32 %v740_v21, %v65_v17  ;;  %v355_v20 = vld [vmem:[%s4368_s0 + $0x3a0] sm:$0xff]  ;;  %v354_v21 = vld [vmem:[%s4368_s0 + $0x398] sm:$0xff] }
 0x107   :  { %1901 = vst.msk [vmem:[%s4370_s2 + $0x208] sm:$0xff] %vm1835_vm0, %v1672_v19 }
 0x108   :  { %1891 = vst.msk [vmem:[%s4370_s2 + $0x1b8] sm:$0xff] %vm1835_vm0, %v1662_v22  ;;  %v353_v22 = vld [vmem:[%s4368_s0 + $0x390] sm:$0xff] }
 0x109   :  { %1890 = vst.msk [vmem:[%s4370_s2 + $0x1b0] sm:$0xff] %vm1835_vm0, %v1661_v23  ;;  %v94_v23 = vld [vmem:[%s4369_s1 + $0x298] sm:$0xff] }
 0x10a   :  { %974 = vperm.xlu2 %2071, %v340_v24   ;;  %v84_v24 = vld [vmem:[%s4369_s1 + $0x248] sm:$0xff] }
 0x10b   :  { %969 = vperm.xlu1 %2070, %v339_v25   ;;  %964 = vperm.xlu0 %2069, %v338_v26   ;;  %v83_v25 = vld [vmem:[%s4369_s1 + $0x240] sm:$0xff] }
 0x10c   :  { %v810_v30 = vpop.permute.xlu2 %809 }
 0x10d   :  { %v1675_v31 = vmul.f32 %v810_v30, %v79_v27  ;;  %v760_v32 = vpop.permute.xlu1 %759  ;;  %v755_v33 = vpop.permute.xlu0 %754 }
 0x10e   :  { %v1665_v34 = vmul.f32 %v760_v32, %v69_v28  ;;  %v1664_v35 = vmul.f32 %v755_v33, %v68_v29  ;;  %v358_v32 = vld [vmem:[%s4368_s0 + $0x3b8] sm:$0xff]  ;;  %v357_v33 = vld [vmem:[%s4368_s0 + $0x3b0] sm:$0xff] }
 0x10f   :  { %1904 = vst.msk [vmem:[%s4370_s2 + $0x220] sm:$0xff] %vm1835_vm0, %v1675_v31 }
 0x110   :  { %1894 = vst.msk [vmem:[%s4370_s2 + $0x1d0] sm:$0xff] %vm1835_vm0, %v1665_v34  ;;  %v356_v34 = vld [vmem:[%s4368_s0 + $0x3a8] sm:$0xff] }
 0x111   :  { %1893 = vst.msk [vmem:[%s4370_s2 + $0x1c8] sm:$0xff] %vm1835_vm0, %v1664_v35  ;;  %v97_v35 = vld [vmem:[%s4369_s1 + $0x2b0] sm:$0xff] }
 0x112   :  { %989 = vperm.xlu2 %2071, %v343_v36   ;;  %v87_v36 = vld [vmem:[%s4369_s1 + $0x260] sm:$0xff] }
 0x113   :  { %984 = vperm.xlu1 %2070, %v342_v37   ;;  %979 = vperm.xlu0 %2069, %v341_v38   ;;  %v86_v37 = vld [vmem:[%s4369_s1 + $0x258] sm:$0xff] }
 0x114   :  { %v825_v42 = vpop.permute.xlu2 %824 }
 0x115   :  { %v1678_v43 = vmul.f32 %v825_v42, %v82_v39  ;;  %v775_v44 = vpop.permute.xlu1 %774  ;;  %v770_v45 = vpop.permute.xlu0 %769 }
 0x116   :  { %v1668_v46 = vmul.f32 %v775_v44, %v72_v40  ;;  %v1667_v47 = vmul.f32 %v770_v45, %v71_v41  ;;  %v361_v44 = vld [vmem:[%s4368_s0 + $0x3d0] sm:$0xff]  ;;  %v360_v45 = vld [vmem:[%s4368_s0 + $0x3c8] sm:$0xff] }
 0x117   :  { %1907 = vst.msk [vmem:[%s4370_s2 + $0x238] sm:$0xff] %vm1835_vm0, %v1678_v43 }
 0x118   :  { %1897 = vst.msk [vmem:[%s4370_s2 + $0x1e8] sm:$0xff] %vm1835_vm0, %v1668_v46  ;;  %v359_v46 = vld [vmem:[%s4368_s0 + $0x3c0] sm:$0xff] }
 0x119   :  { %1896 = vst.msk [vmem:[%s4370_s2 + $0x1e0] sm:$0xff] %vm1835_vm0, %v1667_v47  ;;  %v100_v47 = vld [vmem:[%s4369_s1 + $0x2c8] sm:$0xff] }
 0x11a   :  { %1004 = vperm.xlu2 %2071, %v346_v48   ;;  %v90_v48 = vld [vmem:[%s4369_s1 + $0x278] sm:$0xff] }
 0x11b   :  { %999 = vperm.xlu1 %2070, %v345_v49   ;;  %994 = vperm.xlu0 %2069, %v344_v50   ;;  %v89_v49 = vld [vmem:[%s4369_s1 + $0x270] sm:$0xff] }
 0x11c   :  { %v840_v54 = vpop.permute.xlu2 %839 }
 0x11d   :  { %v1681_v55 = vmul.f32 %v840_v54, %v85_v51  ;;  %v790_v56 = vpop.permute.xlu1 %789  ;;  %v785_v57 = vpop.permute.xlu0 %784 }
 0x11e   :  { %v1671_v58 = vmul.f32 %v790_v56, %v75_v52  ;;  %v1670_v59 = vmul.f32 %v785_v57, %v74_v53  ;;  %v364_v56 = vld [vmem:[%s4368_s0 + $0x3e8] sm:$0xff]  ;;  %v363_v57 = vld [vmem:[%s4368_s0 + $0x3e0] sm:$0xff] }
 0x11f   :  { %1910 = vst.msk [vmem:[%s4370_s2 + $0x250] sm:$0xff] %vm1835_vm0, %v1681_v55 }
 0x120   :  { %1900 = vst.msk [vmem:[%s4370_s2 + $0x200] sm:$0xff] %vm1835_vm0, %v1671_v58  ;;  %v362_v58 = vld [vmem:[%s4368_s0 + $0x3d8] sm:$0xff] }
 0x121   :  { %1899 = vst.msk [vmem:[%s4370_s2 + $0x1f8] sm:$0xff] %vm1835_vm0, %v1670_v59  ;;  %v103_v59 = vld [vmem:[%s4369_s1 + $0x2e0] sm:$0xff] }
 0x122   :  { %1019 = vperm.xlu2 %2071, %v349_v60   ;;  %v93_v60 = vld [vmem:[%s4369_s1 + $0x290] sm:$0xff] }
 0x123   :  { %1014 = vperm.xlu1 %2070, %v348_v61   ;;  %1009 = vperm.xlu0 %2069, %v347_v62   ;;  %v92_v61 = vld [vmem:[%s4369_s1 + $0x288] sm:$0xff] }
 0x124   :  { %v855_v2 = vpop.permute.xlu2 %854 }
 0x125   :  { %v1684_v3 = vmul.f32 %v855_v2, %v88_v63  ;;  %v805_v4 = vpop.permute.xlu1 %804  ;;  %v800_v5 = vpop.permute.xlu0 %799 }
 0x126   :  { %v1674_v6 = vmul.f32 %v805_v4, %v78_v0  ;;  %v1673_v7 = vmul.f32 %v800_v5, %v77_v1  ;;  %v367_v4 = vld [vmem:[%s4368_s0 + $0x400] sm:$0xff]  ;;  %v366_v5 = vld [vmem:[%s4368_s0 + $0x3f8] sm:$0xff] }
 0x127   :  { %1913 = vst.msk [vmem:[%s4370_s2 + $0x268] sm:$0xff] %vm1835_vm0, %v1684_v3 }
 0x128   :  { %1903 = vst.msk [vmem:[%s4370_s2 + $0x218] sm:$0xff] %vm1835_vm0, %v1674_v6  ;;  %v365_v6 = vld [vmem:[%s4368_s0 + $0x3f0] sm:$0xff] }
 0x129   :  { %1902 = vst.msk [vmem:[%s4370_s2 + $0x210] sm:$0xff] %vm1835_vm0, %v1673_v7  ;;  %v106_v7 = vld [vmem:[%s4369_s1 + $0x2f8] sm:$0xff] }
 0x12a   :  { %1034 = vperm.xlu2 %2071, %v352_v8   ;;  %v96_v8 = vld [vmem:[%s4369_s1 + $0x2a8] sm:$0xff] }
 0x12b   :  { %1029 = vperm.xlu1 %2070, %v351_v9   ;;  %1024 = vperm.xlu0 %2069, %v350_v10   ;;  %v95_v9 = vld [vmem:[%s4369_s1 + $0x2a0] sm:$0xff] }
 0x12c   :  { %v870_v14 = vpop.permute.xlu2 %869 }
 0x12d   :  { %v1687_v15 = vmul.f32 %v870_v14, %v91_v11  ;;  %v820_v16 = vpop.permute.xlu1 %819  ;;  %v815_v17 = vpop.permute.xlu0 %814 }
 0x12e   :  { %v1677_v18 = vmul.f32 %v820_v16, %v81_v12  ;;  %v1676_v19 = vmul.f32 %v815_v17, %v80_v13  ;;  %v370_v16 = vld [vmem:[%s4368_s0 + $0x418] sm:$0xff]  ;;  %v369_v17 = vld [vmem:[%s4368_s0 + $0x410] sm:$0xff] }
 0x12f   :  { %1916 = vst.msk [vmem:[%s4370_s2 + $0x280] sm:$0xff] %vm1835_vm0, %v1687_v15 }
 0x130   :  { %1906 = vst.msk [vmem:[%s4370_s2 + $0x230] sm:$0xff] %vm1835_vm0, %v1677_v18  ;;  %v368_v18 = vld [vmem:[%s4368_s0 + $0x408] sm:$0xff] }
 0x131   :  { %1905 = vst.msk [vmem:[%s4370_s2 + $0x228] sm:$0xff] %vm1835_vm0, %v1676_v19  ;;  %v109_v19 = vld [vmem:[%s4369_s1 + $0x310] sm:$0xff] }
 0x132   :  { %1049 = vperm.xlu2 %2071, %v355_v20   ;;  %v99_v20 = vld [vmem:[%s4369_s1 + $0x2c0] sm:$0xff] }
 0x133   :  { %1044 = vperm.xlu1 %2070, %v354_v21   ;;  %1039 = vperm.xlu0 %2069, %v353_v22   ;;  %v98_v21 = vld [vmem:[%s4369_s1 + $0x2b8] sm:$0xff] }
 0x134   :  { %v885_v26 = vpop.permute.xlu2 %884 }
 0x135   :  { %v1690_v27 = vmul.f32 %v885_v26, %v94_v23  ;;  %v835_v28 = vpop.permute.xlu1 %834  ;;  %v830_v29 = vpop.permute.xlu0 %829 }
 0x136   :  { %v1680_v30 = vmul.f32 %v835_v28, %v84_v24  ;;  %v1679_v31 = vmul.f32 %v830_v29, %v83_v25  ;;  %v373_v28 = vld [vmem:[%s4368_s0 + $0x430] sm:$0xff]  ;;  %v372_v29 = vld [vmem:[%s4368_s0 + $0x428] sm:$0xff] }
 0x137   :  { %1919 = vst.msk [vmem:[%s4370_s2 + $0x298] sm:$0xff] %vm1835_vm0, %v1690_v27 }
 0x138   :  { %1909 = vst.msk [vmem:[%s4370_s2 + $0x248] sm:$0xff] %vm1835_vm0, %v1680_v30  ;;  %v371_v30 = vld [vmem:[%s4368_s0 + $0x420] sm:$0xff] }
 0x139   :  { %1908 = vst.msk [vmem:[%s4370_s2 + $0x240] sm:$0xff] %vm1835_vm0, %v1679_v31  ;;  %v112_v31 = vld [vmem:[%s4369_s1 + $0x328] sm:$0xff] }
 0x13a   :  { %1064 = vperm.xlu2 %2071, %v358_v32   ;;  %v102_v32 = vld [vmem:[%s4369_s1 + $0x2d8] sm:$0xff] }
 0x13b   :  { %1059 = vperm.xlu1 %2070, %v357_v33   ;;  %1054 = vperm.xlu0 %2069, %v356_v34   ;;  %v101_v33 = vld [vmem:[%s4369_s1 + $0x2d0] sm:$0xff] }
 0x13c   :  { %v900_v38 = vpop.permute.xlu2 %899 }
 0x13d   :  { %v1693_v39 = vmul.f32 %v900_v38, %v97_v35  ;;  %v850_v40 = vpop.permute.xlu1 %849  ;;  %v845_v41 = vpop.permute.xlu0 %844 }
 0x13e   :  { %v1683_v42 = vmul.f32 %v850_v40, %v87_v36  ;;  %v1682_v43 = vmul.f32 %v845_v41, %v86_v37  ;;  %v376_v40 = vld [vmem:[%s4368_s0 + $0x448] sm:$0xff]  ;;  %v375_v41 = vld [vmem:[%s4368_s0 + $0x440] sm:$0xff] }
 0x13f   :  { %1922 = vst.msk [vmem:[%s4370_s2 + $0x2b0] sm:$0xff] %vm1835_vm0, %v1693_v39 }
 0x140   :  { %1912 = vst.msk [vmem:[%s4370_s2 + $0x260] sm:$0xff] %vm1835_vm0, %v1683_v42  ;;  %v374_v42 = vld [vmem:[%s4368_s0 + $0x438] sm:$0xff] }
 0x141   :  { %1911 = vst.msk [vmem:[%s4370_s2 + $0x258] sm:$0xff] %vm1835_vm0, %v1682_v43  ;;  %v115_v43 = vld [vmem:[%s4369_s1 + $0x340] sm:$0xff] }
 0x142   :  { %1079 = vperm.xlu2 %2071, %v361_v44   ;;  %v105_v44 = vld [vmem:[%s4369_s1 + $0x2f0] sm:$0xff] }
 0x143   :  { %1074 = vperm.xlu1 %2070, %v360_v45   ;;  %1069 = vperm.xlu0 %2069, %v359_v46   ;;  %v104_v45 = vld [vmem:[%s4369_s1 + $0x2e8] sm:$0xff] }
 0x144   :  { %v915_v50 = vpop.permute.xlu2 %914 }
 0x145   :  { %v1696_v51 = vmul.f32 %v915_v50, %v100_v47  ;;  %v865_v52 = vpop.permute.xlu1 %864  ;;  %v860_v53 = vpop.permute.xlu0 %859 }
 0x146   :  { %v1686_v54 = vmul.f32 %v865_v52, %v90_v48  ;;  %v1685_v55 = vmul.f32 %v860_v53, %v89_v49  ;;  %v379_v52 = vld [vmem:[%s4368_s0 + $0x460] sm:$0xff]  ;;  %v378_v53 = vld [vmem:[%s4368_s0 + $0x458] sm:$0xff] }
 0x147   :  { %1925 = vst.msk [vmem:[%s4370_s2 + $0x2c8] sm:$0xff] %vm1835_vm0, %v1696_v51 }
 0x148   :  { %1915 = vst.msk [vmem:[%s4370_s2 + $0x278] sm:$0xff] %vm1835_vm0, %v1686_v54  ;;  %v377_v54 = vld [vmem:[%s4368_s0 + $0x450] sm:$0xff] }
 0x149   :  { %1914 = vst.msk [vmem:[%s4370_s2 + $0x270] sm:$0xff] %vm1835_vm0, %v1685_v55  ;;  %v118_v55 = vld [vmem:[%s4369_s1 + $0x358] sm:$0xff] }
 0x14a   :  { %1094 = vperm.xlu2 %2071, %v364_v56   ;;  %v108_v56 = vld [vmem:[%s4369_s1 + $0x308] sm:$0xff] }
 0x14b   :  { %1089 = vperm.xlu1 %2070, %v363_v57   ;;  %1084 = vperm.xlu0 %2069, %v362_v58   ;;  %v107_v57 = vld [vmem:[%s4369_s1 + $0x300] sm:$0xff] }
 0x14c   :  { %v930_v62 = vpop.permute.xlu2 %929 }
 0x14d   :  { %v1699_v63 = vmul.f32 %v930_v62, %v103_v59  ;;  %v880_v0 = vpop.permute.xlu1 %879  ;;  %v875_v1 = vpop.permute.xlu0 %874 }
 0x14e   :  { %v1689_v2 = vmul.f32 %v880_v0, %v93_v60  ;;  %v1688_v3 = vmul.f32 %v875_v1, %v92_v61  ;;  %v382_v0 = vld [vmem:[%s4368_s0 + $0x478] sm:$0xff]  ;;  %v381_v1 = vld [vmem:[%s4368_s0 + $0x470] sm:$0xff] }
 0x14f   :  { %1928 = vst.msk [vmem:[%s4370_s2 + $0x2e0] sm:$0xff] %vm1835_vm0, %v1699_v63 }
 0x150   :  { %1918 = vst.msk [vmem:[%s4370_s2 + $0x290] sm:$0xff] %vm1835_vm0, %v1689_v2  ;;  %v380_v2 = vld [vmem:[%s4368_s0 + $0x468] sm:$0xff] }
 0x151   :  { %1917 = vst.msk [vmem:[%s4370_s2 + $0x288] sm:$0xff] %vm1835_vm0, %v1688_v3  ;;  %v121_v3 = vld [vmem:[%s4369_s1 + $0x370] sm:$0xff] }
 0x152   :  { %1109 = vperm.xlu2 %2071, %v367_v4   ;;  %v111_v4 = vld [vmem:[%s4369_s1 + $0x320] sm:$0xff] }
 0x153   :  { %1104 = vperm.xlu1 %2070, %v366_v5   ;;  %1099 = vperm.xlu0 %2069, %v365_v6   ;;  %v110_v5 = vld [vmem:[%s4369_s1 + $0x318] sm:$0xff] }
 0x154   :  { %v945_v10 = vpop.permute.xlu2 %944 }
 0x155   :  { %v1702_v11 = vmul.f32 %v945_v10, %v106_v7  ;;  %v895_v12 = vpop.permute.xlu1 %894  ;;  %v890_v13 = vpop.permute.xlu0 %889 }
 0x156   :  { %v1692_v14 = vmul.f32 %v895_v12, %v96_v8  ;;  %v1691_v15 = vmul.f32 %v890_v13, %v95_v9  ;;  %v385_v12 = vld [vmem:[%s4368_s0 + $0x490] sm:$0xff]  ;;  %v384_v13 = vld [vmem:[%s4368_s0 + $0x488] sm:$0xff] }
 0x157   :  { %1931 = vst.msk [vmem:[%s4370_s2 + $0x2f8] sm:$0xff] %vm1835_vm0, %v1702_v11 }
 0x158   :  { %1921 = vst.msk [vmem:[%s4370_s2 + $0x2a8] sm:$0xff] %vm1835_vm0, %v1692_v14  ;;  %v383_v14 = vld [vmem:[%s4368_s0 + $0x480] sm:$0xff] }
 0x159   :  { %1920 = vst.msk [vmem:[%s4370_s2 + $0x2a0] sm:$0xff] %vm1835_vm0, %v1691_v15  ;;  %v124_v15 = vld [vmem:[%s4369_s1 + $0x388] sm:$0xff] }
 0x15a   :  { %1124 = vperm.xlu2 %2071, %v370_v16   ;;  %v114_v16 = vld [vmem:[%s4369_s1 + $0x338] sm:$0xff] }
 0x15b   :  { %1119 = vperm.xlu1 %2070, %v369_v17   ;;  %1114 = vperm.xlu0 %2069, %v368_v18   ;;  %v113_v17 = vld [vmem:[%s4369_s1 + $0x330] sm:$0xff] }
 0x15c   :  { %v960_v22 = vpop.permute.xlu2 %959 }
 0x15d   :  { %v1705_v23 = vmul.f32 %v960_v22, %v109_v19  ;;  %v910_v24 = vpop.permute.xlu1 %909  ;;  %v905_v25 = vpop.permute.xlu0 %904 }
 0x15e   :  { %v1695_v26 = vmul.f32 %v910_v24, %v99_v20  ;;  %v1694_v27 = vmul.f32 %v905_v25, %v98_v21  ;;  %v388_v24 = vld [vmem:[%s4368_s0 + $0x4a8] sm:$0xff]  ;;  %v387_v25 = vld [vmem:[%s4368_s0 + $0x4a0] sm:$0xff] }
 0x15f   :  { %1934 = vst.msk [vmem:[%s4370_s2 + $0x310] sm:$0xff] %vm1835_vm0, %v1705_v23 }
 0x160   :  { %1924 = vst.msk [vmem:[%s4370_s2 + $0x2c0] sm:$0xff] %vm1835_vm0, %v1695_v26  ;;  %v386_v26 = vld [vmem:[%s4368_s0 + $0x498] sm:$0xff] }
 0x161   :  { %1923 = vst.msk [vmem:[%s4370_s2 + $0x2b8] sm:$0xff] %vm1835_vm0, %v1694_v27  ;;  %v127_v27 = vld [vmem:[%s4369_s1 + $0x3a0] sm:$0xff] }
 0x162   :  { %1139 = vperm.xlu2 %2071, %v373_v28   ;;  %v117_v28 = vld [vmem:[%s4369_s1 + $0x350] sm:$0xff] }
 0x163   :  { %1134 = vperm.xlu1 %2070, %v372_v29   ;;  %1129 = vperm.xlu0 %2069, %v371_v30   ;;  %v116_v29 = vld [vmem:[%s4369_s1 + $0x348] sm:$0xff] }
 0x164   :  { %v975_v34 = vpop.permute.xlu2 %974 }
 0x165   :  { %v1708_v35 = vmul.f32 %v975_v34, %v112_v31  ;;  %v925_v36 = vpop.permute.xlu1 %924  ;;  %v920_v37 = vpop.permute.xlu0 %919 }
 0x166   :  { %v1698_v38 = vmul.f32 %v925_v36, %v102_v32  ;;  %v1697_v39 = vmul.f32 %v920_v37, %v101_v33  ;;  %v391_v36 = vld [vmem:[%s4368_s0 + $0x4c0] sm:$0xff]  ;;  %v390_v37 = vld [vmem:[%s4368_s0 + $0x4b8] sm:$0xff] }
 0x167   :  { %1937 = vst.msk [vmem:[%s4370_s2 + $0x328] sm:$0xff] %vm1835_vm0, %v1708_v35 }
 0x168   :  { %1927 = vst.msk [vmem:[%s4370_s2 + $0x2d8] sm:$0xff] %vm1835_vm0, %v1698_v38  ;;  %v389_v38 = vld [vmem:[%s4368_s0 + $0x4b0] sm:$0xff] }
 0x169   :  { %1926 = vst.msk [vmem:[%s4370_s2 + $0x2d0] sm:$0xff] %vm1835_vm0, %v1697_v39  ;;  %v130_v39 = vld [vmem:[%s4369_s1 + $0x3b8] sm:$0xff] }
 0x16a   :  { %1154 = vperm.xlu2 %2071, %v376_v40   ;;  %v120_v40 = vld [vmem:[%s4369_s1 + $0x368] sm:$0xff] }
 0x16b   :  { %1149 = vperm.xlu1 %2070, %v375_v41   ;;  %1144 = vperm.xlu0 %2069, %v374_v42   ;;  %v119_v41 = vld [vmem:[%s4369_s1 + $0x360] sm:$0xff] }
 0x16c   :  { %v990_v46 = vpop.permute.xlu2 %989 }
 0x16d   :  { %v1711_v47 = vmul.f32 %v990_v46, %v115_v43  ;;  %v940_v48 = vpop.permute.xlu1 %939  ;;  %v935_v49 = vpop.permute.xlu0 %934 }
 0x16e   :  { %v1701_v50 = vmul.f32 %v940_v48, %v105_v44  ;;  %v1700_v51 = vmul.f32 %v935_v49, %v104_v45  ;;  %v394_v48 = vld [vmem:[%s4368_s0 + $0x4d8] sm:$0xff]  ;;  %v393_v49 = vld [vmem:[%s4368_s0 + $0x4d0] sm:$0xff] }
 0x16f   :  { %1940 = vst.msk [vmem:[%s4370_s2 + $0x340] sm:$0xff] %vm1835_vm0, %v1711_v47 }
 0x170   :  { %1930 = vst.msk [vmem:[%s4370_s2 + $0x2f0] sm:$0xff] %vm1835_vm0, %v1701_v50  ;;  %v392_v50 = vld [vmem:[%s4368_s0 + $0x4c8] sm:$0xff] }
 0x171   :  { %1929 = vst.msk [vmem:[%s4370_s2 + $0x2e8] sm:$0xff] %vm1835_vm0, %v1700_v51  ;;  %v133_v51 = vld [vmem:[%s4369_s1 + $0x3d0] sm:$0xff] }
 0x172   :  { %1169 = vperm.xlu2 %2071, %v379_v52   ;;  %v123_v52 = vld [vmem:[%s4369_s1 + $0x380] sm:$0xff] }
 0x173   :  { %1164 = vperm.xlu1 %2070, %v378_v53   ;;  %1159 = vperm.xlu0 %2069, %v377_v54   ;;  %v122_v53 = vld [vmem:[%s4369_s1 + $0x378] sm:$0xff] }
 0x174   :  { %v1005_v58 = vpop.permute.xlu2 %1004 }
 0x175   :  { %v1714_v59 = vmul.f32 %v1005_v58, %v118_v55  ;;  %v955_v60 = vpop.permute.xlu1 %954  ;;  %v950_v61 = vpop.permute.xlu0 %949 }
 0x176   :  { %v1704_v62 = vmul.f32 %v955_v60, %v108_v56  ;;  %v1703_v63 = vmul.f32 %v950_v61, %v107_v57  ;;  %v397_v60 = vld [vmem:[%s4368_s0 + $0x4f0] sm:$0xff]  ;;  %v396_v61 = vld [vmem:[%s4368_s0 + $0x4e8] sm:$0xff] }
 0x177   :  { %1943 = vst.msk [vmem:[%s4370_s2 + $0x358] sm:$0xff] %vm1835_vm0, %v1714_v59 }
 0x178   :  { %1933 = vst.msk [vmem:[%s4370_s2 + $0x308] sm:$0xff] %vm1835_vm0, %v1704_v62  ;;  %v395_v62 = vld [vmem:[%s4368_s0 + $0x4e0] sm:$0xff] }
 0x179   :  { %1932 = vst.msk [vmem:[%s4370_s2 + $0x300] sm:$0xff] %vm1835_vm0, %v1703_v63  ;;  %v136_v63 = vld [vmem:[%s4369_s1 + $0x3e8] sm:$0xff] }
 0x17a   :  { %1184 = vperm.xlu2 %2071, %v382_v0   ;;  %v126_v0 = vld [vmem:[%s4369_s1 + $0x398] sm:$0xff] }
 0x17b   :  { %1179 = vperm.xlu1 %2070, %v381_v1   ;;  %1174 = vperm.xlu0 %2069, %v380_v2   ;;  %v125_v1 = vld [vmem:[%s4369_s1 + $0x390] sm:$0xff] }
 0x17c   :  { %v1020_v6 = vpop.permute.xlu2 %1019 }
 0x17d   :  { %v1717_v7 = vmul.f32 %v1020_v6, %v121_v3  ;;  %v970_v8 = vpop.permute.xlu1 %969  ;;  %v965_v9 = vpop.permute.xlu0 %964 }
 0x17e   :  { %v1707_v10 = vmul.f32 %v970_v8, %v111_v4  ;;  %v1706_v11 = vmul.f32 %v965_v9, %v110_v5  ;;  %v400_v8 = vld [vmem:[%s4368_s0 + $0x508] sm:$0xff]  ;;  %v399_v9 = vld [vmem:[%s4368_s0 + $0x500] sm:$0xff] }
 0x17f   :  { %1946 = vst.msk [vmem:[%s4370_s2 + $0x370] sm:$0xff] %vm1835_vm0, %v1717_v7 }
 0x180   :  { %1936 = vst.msk [vmem:[%s4370_s2 + $0x320] sm:$0xff] %vm1835_vm0, %v1707_v10  ;;  %v398_v10 = vld [vmem:[%s4368_s0 + $0x4f8] sm:$0xff] }
 0x181   :  { %1935 = vst.msk [vmem:[%s4370_s2 + $0x318] sm:$0xff] %vm1835_vm0, %v1706_v11  ;;  %v139_v11 = vld [vmem:[%s4369_s1 + $0x400] sm:$0xff] }
 0x182   :  { %1199 = vperm.xlu2 %2071, %v385_v12   ;;  %v129_v12 = vld [vmem:[%s4369_s1 + $0x3b0] sm:$0xff] }
 0x183   :  { %1194 = vperm.xlu1 %2070, %v384_v13   ;;  %1189 = vperm.xlu0 %2069, %v383_v14   ;;  %v128_v13 = vld [vmem:[%s4369_s1 + $0x3a8] sm:$0xff] }
 0x184   :  { %v1035_v18 = vpop.permute.xlu2 %1034 }
 0x185   :  { %v1720_v19 = vmul.f32 %v1035_v18, %v124_v15  ;;  %v985_v20 = vpop.permute.xlu1 %984  ;;  %v980_v21 = vpop.permute.xlu0 %979 }
 0x186   :  { %v1710_v22 = vmul.f32 %v985_v20, %v114_v16  ;;  %v1709_v23 = vmul.f32 %v980_v21, %v113_v17  ;;  %v403_v20 = vld [vmem:[%s4368_s0 + $0x520] sm:$0xff]  ;;  %v402_v21 = vld [vmem:[%s4368_s0 + $0x518] sm:$0xff] }
 0x187   :  { %1949 = vst.msk [vmem:[%s4370_s2 + $0x388] sm:$0xff] %vm1835_vm0, %v1720_v19 }
 0x188   :  { %1939 = vst.msk [vmem:[%s4370_s2 + $0x338] sm:$0xff] %vm1835_vm0, %v1710_v22  ;;  %v401_v22 = vld [vmem:[%s4368_s0 + $0x510] sm:$0xff] }
 0x189   :  { %1938 = vst.msk [vmem:[%s4370_s2 + $0x330] sm:$0xff] %vm1835_vm0, %v1709_v23  ;;  %v142_v23 = vld [vmem:[%s4369_s1 + $0x418] sm:$0xff] }
 0x18a   :  { %1214 = vperm.xlu2 %2071, %v388_v24   ;;  %v132_v24 = vld [vmem:[%s4369_s1 + $0x3c8] sm:$0xff] }
 0x18b   :  { %1209 = vperm.xlu1 %2070, %v387_v25   ;;  %1204 = vperm.xlu0 %2069, %v386_v26   ;;  %v131_v25 = vld [vmem:[%s4369_s1 + $0x3c0] sm:$0xff] }
 0x18c   :  { %v1050_v30 = vpop.permute.xlu2 %1049 }
 0x18d   :  { %v1723_v31 = vmul.f32 %v1050_v30, %v127_v27  ;;  %v1000_v32 = vpop.permute.xlu1 %999  ;;  %v995_v33 = vpop.permute.xlu0 %994 }
 0x18e   :  { %v1713_v34 = vmul.f32 %v1000_v32, %v117_v28  ;;  %v1712_v35 = vmul.f32 %v995_v33, %v116_v29  ;;  %v406_v32 = vld [vmem:[%s4368_s0 + $0x538] sm:$0xff]  ;;  %v405_v33 = vld [vmem:[%s4368_s0 + $0x530] sm:$0xff] }
 0x18f   :  { %1952 = vst.msk [vmem:[%s4370_s2 + $0x3a0] sm:$0xff] %vm1835_vm0, %v1723_v31 }
 0x190   :  { %1942 = vst.msk [vmem:[%s4370_s2 + $0x350] sm:$0xff] %vm1835_vm0, %v1713_v34  ;;  %v404_v34 = vld [vmem:[%s4368_s0 + $0x528] sm:$0xff] }
 0x191   :  { %1941 = vst.msk [vmem:[%s4370_s2 + $0x348] sm:$0xff] %vm1835_vm0, %v1712_v35  ;;  %v145_v35 = vld [vmem:[%s4369_s1 + $0x430] sm:$0xff] }
 0x192   :  { %1229 = vperm.xlu2 %2071, %v391_v36   ;;  %v135_v36 = vld [vmem:[%s4369_s1 + $0x3e0] sm:$0xff] }
 0x193   :  { %1224 = vperm.xlu1 %2070, %v390_v37   ;;  %1219 = vperm.xlu0 %2069, %v389_v38   ;;  %v134_v37 = vld [vmem:[%s4369_s1 + $0x3d8] sm:$0xff] }
 0x194   :  { %v1065_v42 = vpop.permute.xlu2 %1064 }
 0x195   :  { %v1726_v43 = vmul.f32 %v1065_v42, %v130_v39  ;;  %v1015_v44 = vpop.permute.xlu1 %1014  ;;  %v1010_v45 = vpop.permute.xlu0 %1009 }
 0x196   :  { %v1716_v46 = vmul.f32 %v1015_v44, %v120_v40  ;;  %v1715_v47 = vmul.f32 %v1010_v45, %v119_v41  ;;  %v409_v44 = vld [vmem:[%s4368_s0 + $0x550] sm:$0xff]  ;;  %v408_v45 = vld [vmem:[%s4368_s0 + $0x548] sm:$0xff] }
 0x197   :  { %1955 = vst.msk [vmem:[%s4370_s2 + $0x3b8] sm:$0xff] %vm1835_vm0, %v1726_v43 }
 0x198   :  { %1945 = vst.msk [vmem:[%s4370_s2 + $0x368] sm:$0xff] %vm1835_vm0, %v1716_v46  ;;  %v407_v46 = vld [vmem:[%s4368_s0 + $0x540] sm:$0xff] }
 0x199   :  { %1944 = vst.msk [vmem:[%s4370_s2 + $0x360] sm:$0xff] %vm1835_vm0, %v1715_v47  ;;  %v148_v47 = vld [vmem:[%s4369_s1 + $0x448] sm:$0xff] }
 0x19a   :  { %1244 = vperm.xlu2 %2071, %v394_v48   ;;  %v138_v48 = vld [vmem:[%s4369_s1 + $0x3f8] sm:$0xff] }
 0x19b   :  { %1239 = vperm.xlu1 %2070, %v393_v49   ;;  %1234 = vperm.xlu0 %2069, %v392_v50   ;;  %v137_v49 = vld [vmem:[%s4369_s1 + $0x3f0] sm:$0xff] }
 0x19c   :  { %v1080_v54 = vpop.permute.xlu2 %1079 }
 0x19d   :  { %v1729_v55 = vmul.f32 %v1080_v54, %v133_v51  ;;  %v1030_v56 = vpop.permute.xlu1 %1029  ;;  %v1025_v57 = vpop.permute.xlu0 %1024 }
 0x19e   :  { %v1719_v58 = vmul.f32 %v1030_v56, %v123_v52  ;;  %v1718_v59 = vmul.f32 %v1025_v57, %v122_v53  ;;  %v412_v56 = vld [vmem:[%s4368_s0 + $0x568] sm:$0xff]  ;;  %v411_v57 = vld [vmem:[%s4368_s0 + $0x560] sm:$0xff] }
 0x19f   :  { %1958 = vst.msk [vmem:[%s4370_s2 + $0x3d0] sm:$0xff] %vm1835_vm0, %v1729_v55 }
 0x1a0   :  { %1948 = vst.msk [vmem:[%s4370_s2 + $0x380] sm:$0xff] %vm1835_vm0, %v1719_v58  ;;  %v410_v58 = vld [vmem:[%s4368_s0 + $0x558] sm:$0xff] }
 0x1a1   :  { %1947 = vst.msk [vmem:[%s4370_s2 + $0x378] sm:$0xff] %vm1835_vm0, %v1718_v59  ;;  %v151_v59 = vld [vmem:[%s4369_s1 + $0x460] sm:$0xff] }
 0x1a2   :  { %1259 = vperm.xlu2 %2071, %v397_v60   ;;  %v141_v60 = vld [vmem:[%s4369_s1 + $0x410] sm:$0xff] }
 0x1a3   :  { %1254 = vperm.xlu1 %2070, %v396_v61   ;;  %1249 = vperm.xlu0 %2069, %v395_v62   ;;  %v140_v61 = vld [vmem:[%s4369_s1 + $0x408] sm:$0xff] }
 0x1a4   :  { %v1095_v2 = vpop.permute.xlu2 %1094 }
 0x1a5   :  { %v1732_v3 = vmul.f32 %v1095_v2, %v136_v63  ;;  %v1045_v4 = vpop.permute.xlu1 %1044  ;;  %v1040_v5 = vpop.permute.xlu0 %1039 }
 0x1a6   :  { %v1722_v6 = vmul.f32 %v1045_v4, %v126_v0  ;;  %v1721_v7 = vmul.f32 %v1040_v5, %v125_v1  ;;  %v415_v4 = vld [vmem:[%s4368_s0 + $0x580] sm:$0xff]  ;;  %v414_v5 = vld [vmem:[%s4368_s0 + $0x578] sm:$0xff] }
 0x1a7   :  { %1961 = vst.msk [vmem:[%s4370_s2 + $0x3e8] sm:$0xff] %vm1835_vm0, %v1732_v3 }
 0x1a8   :  { %1951 = vst.msk [vmem:[%s4370_s2 + $0x398] sm:$0xff] %vm1835_vm0, %v1722_v6  ;;  %v413_v6 = vld [vmem:[%s4368_s0 + $0x570] sm:$0xff] }
 0x1a9   :  { %1950 = vst.msk [vmem:[%s4370_s2 + $0x390] sm:$0xff] %vm1835_vm0, %v1721_v7  ;;  %v154_v7 = vld [vmem:[%s4369_s1 + $0x478] sm:$0xff] }
 0x1aa   :  { %1274 = vperm.xlu2 %2071, %v400_v8   ;;  %v144_v8 = vld [vmem:[%s4369_s1 + $0x428] sm:$0xff] }
 0x1ab   :  { %1269 = vperm.xlu1 %2070, %v399_v9   ;;  %1264 = vperm.xlu0 %2069, %v398_v10   ;;  %v143_v9 = vld [vmem:[%s4369_s1 + $0x420] sm:$0xff] }
 0x1ac   :  { %v1110_v14 = vpop.permute.xlu2 %1109 }
 0x1ad   :  { %v1735_v15 = vmul.f32 %v1110_v14, %v139_v11  ;;  %v1060_v16 = vpop.permute.xlu1 %1059  ;;  %v1055_v17 = vpop.permute.xlu0 %1054 }
 0x1ae   :  { %v1725_v18 = vmul.f32 %v1060_v16, %v129_v12  ;;  %v1724_v19 = vmul.f32 %v1055_v17, %v128_v13  ;;  %v418_v16 = vld [vmem:[%s4368_s0 + $0x598] sm:$0xff]  ;;  %v417_v17 = vld [vmem:[%s4368_s0 + $0x590] sm:$0xff] }
 0x1af   :  { %1964 = vst.msk [vmem:[%s4370_s2 + $0x400] sm:$0xff] %vm1835_vm0, %v1735_v15 }
 0x1b0   :  { %1954 = vst.msk [vmem:[%s4370_s2 + $0x3b0] sm:$0xff] %vm1835_vm0, %v1725_v18  ;;  %v416_v18 = vld [vmem:[%s4368_s0 + $0x588] sm:$0xff] }
 0x1b1   :  { %1953 = vst.msk [vmem:[%s4370_s2 + $0x3a8] sm:$0xff] %vm1835_vm0, %v1724_v19  ;;  %v157_v19 = vld [vmem:[%s4369_s1 + $0x490] sm:$0xff] }
 0x1b2   :  { %1289 = vperm.xlu2 %2071, %v403_v20   ;;  %v147_v20 = vld [vmem:[%s4369_s1 + $0x440] sm:$0xff] }
 0x1b3   :  { %1284 = vperm.xlu1 %2070, %v402_v21   ;;  %1279 = vperm.xlu0 %2069, %v401_v22   ;;  %v146_v21 = vld [vmem:[%s4369_s1 + $0x438] sm:$0xff] }
 0x1b4   :  { %v1125_v26 = vpop.permute.xlu2 %1124 }
 0x1b5   :  { %v1738_v27 = vmul.f32 %v1125_v26, %v142_v23  ;;  %v1075_v28 = vpop.permute.xlu1 %1074  ;;  %v1070_v29 = vpop.permute.xlu0 %1069 }
 0x1b6   :  { %v1728_v30 = vmul.f32 %v1075_v28, %v132_v24  ;;  %v1727_v31 = vmul.f32 %v1070_v29, %v131_v25  ;;  %v421_v28 = vld [vmem:[%s4368_s0 + $0x5b0] sm:$0xff]  ;;  %v420_v29 = vld [vmem:[%s4368_s0 + $0x5a8] sm:$0xff] }
 0x1b7   :  { %1967 = vst.msk [vmem:[%s4370_s2 + $0x418] sm:$0xff] %vm1835_vm0, %v1738_v27 }
 0x1b8   :  { %1957 = vst.msk [vmem:[%s4370_s2 + $0x3c8] sm:$0xff] %vm1835_vm0, %v1728_v30  ;;  %v419_v30 = vld [vmem:[%s4368_s0 + $0x5a0] sm:$0xff] }
 0x1b9   :  { %1956 = vst.msk [vmem:[%s4370_s2 + $0x3c0] sm:$0xff] %vm1835_vm0, %v1727_v31  ;;  %v160_v31 = vld [vmem:[%s4369_s1 + $0x4a8] sm:$0xff] }
 0x1ba   :  { %1304 = vperm.xlu2 %2071, %v406_v32   ;;  %v150_v32 = vld [vmem:[%s4369_s1 + $0x458] sm:$0xff] }
 0x1bb   :  { %1299 = vperm.xlu1 %2070, %v405_v33   ;;  %1294 = vperm.xlu0 %2069, %v404_v34   ;;  %v149_v33 = vld [vmem:[%s4369_s1 + $0x450] sm:$0xff] }
 0x1bc   :  { %v1140_v38 = vpop.permute.xlu2 %1139 }
 0x1bd   :  { %v1741_v39 = vmul.f32 %v1140_v38, %v145_v35  ;;  %v1090_v40 = vpop.permute.xlu1 %1089  ;;  %v1085_v41 = vpop.permute.xlu0 %1084 }
 0x1be   :  { %v1731_v42 = vmul.f32 %v1090_v40, %v135_v36  ;;  %v1730_v43 = vmul.f32 %v1085_v41, %v134_v37  ;;  %v424_v40 = vld [vmem:[%s4368_s0 + $0x5c8] sm:$0xff]  ;;  %v423_v41 = vld [vmem:[%s4368_s0 + $0x5c0] sm:$0xff] }
 0x1bf   :  { %1970 = vst.msk [vmem:[%s4370_s2 + $0x430] sm:$0xff] %vm1835_vm0, %v1741_v39 }
 0x1c0   :  { %1960 = vst.msk [vmem:[%s4370_s2 + $0x3e0] sm:$0xff] %vm1835_vm0, %v1731_v42  ;;  %v422_v42 = vld [vmem:[%s4368_s0 + $0x5b8] sm:$0xff] }
 0x1c1   :  { %1959 = vst.msk [vmem:[%s4370_s2 + $0x3d8] sm:$0xff] %vm1835_vm0, %v1730_v43  ;;  %v163_v43 = vld [vmem:[%s4369_s1 + $0x4c0] sm:$0xff] }
 0x1c2   :  { %1319 = vperm.xlu2 %2071, %v409_v44   ;;  %v153_v44 = vld [vmem:[%s4369_s1 + $0x470] sm:$0xff] }
 0x1c3   :  { %1314 = vperm.xlu1 %2070, %v408_v45   ;;  %1309 = vperm.xlu0 %2069, %v407_v46   ;;  %v152_v45 = vld [vmem:[%s4369_s1 + $0x468] sm:$0xff] }
 0x1c4   :  { %v1155_v50 = vpop.permute.xlu2 %1154 }
 0x1c5   :  { %v1744_v51 = vmul.f32 %v1155_v50, %v148_v47  ;;  %v1105_v52 = vpop.permute.xlu1 %1104  ;;  %v1100_v53 = vpop.permute.xlu0 %1099 }
 0x1c6   :  { %v1734_v54 = vmul.f32 %v1105_v52, %v138_v48  ;;  %v1733_v55 = vmul.f32 %v1100_v53, %v137_v49  ;;  %v427_v52 = vld [vmem:[%s4368_s0 + $0x5e0] sm:$0xff]  ;;  %v426_v53 = vld [vmem:[%s4368_s0 + $0x5d8] sm:$0xff] }
 0x1c7   :  { %1973 = vst.msk [vmem:[%s4370_s2 + $0x448] sm:$0xff] %vm1835_vm0, %v1744_v51 }
 0x1c8   :  { %1963 = vst.msk [vmem:[%s4370_s2 + $0x3f8] sm:$0xff] %vm1835_vm0, %v1734_v54  ;;  %v425_v54 = vld [vmem:[%s4368_s0 + $0x5d0] sm:$0xff] }
 0x1c9   :  { %1962 = vst.msk [vmem:[%s4370_s2 + $0x3f0] sm:$0xff] %vm1835_vm0, %v1733_v55  ;;  %v166_v55 = vld [vmem:[%s4369_s1 + $0x4d8] sm:$0xff] }
 0x1ca   :  { %1334 = vperm.xlu2 %2071, %v412_v56   ;;  %v156_v56 = vld [vmem:[%s4369_s1 + $0x488] sm:$0xff] }
 0x1cb   :  { %1329 = vperm.xlu1 %2070, %v411_v57   ;;  %1324 = vperm.xlu0 %2069, %v410_v58   ;;  %v155_v57 = vld [vmem:[%s4369_s1 + $0x480] sm:$0xff] }
 0x1cc   :  { %v1170_v62 = vpop.permute.xlu2 %1169 }
 0x1cd   :  { %v1747_v63 = vmul.f32 %v1170_v62, %v151_v59  ;;  %v1120_v0 = vpop.permute.xlu1 %1119  ;;  %v1115_v1 = vpop.permute.xlu0 %1114 }
 0x1ce   :  { %v1737_v2 = vmul.f32 %v1120_v0, %v141_v60  ;;  %v1736_v3 = vmul.f32 %v1115_v1, %v140_v61  ;;  %v430_v0 = vld [vmem:[%s4368_s0 + $0x5f8] sm:$0xff]  ;;  %v429_v1 = vld [vmem:[%s4368_s0 + $0x5f0] sm:$0xff] }
 0x1cf   :  { %1976 = vst.msk [vmem:[%s4370_s2 + $0x460] sm:$0xff] %vm1835_vm0, %v1747_v63 }
 0x1d0   :  { %1966 = vst.msk [vmem:[%s4370_s2 + $0x410] sm:$0xff] %vm1835_vm0, %v1737_v2  ;;  %v428_v2 = vld [vmem:[%s4368_s0 + $0x5e8] sm:$0xff] }
 0x1d1   :  { %1965 = vst.msk [vmem:[%s4370_s2 + $0x408] sm:$0xff] %vm1835_vm0, %v1736_v3  ;;  %v169_v3 = vld [vmem:[%s4369_s1 + $0x4f0] sm:$0xff] }
 0x1d2   :  { %1349 = vperm.xlu2 %2071, %v415_v4   ;;  %v159_v4 = vld [vmem:[%s4369_s1 + $0x4a0] sm:$0xff] }
 0x1d3   :  { %1344 = vperm.xlu1 %2070, %v414_v5   ;;  %1339 = vperm.xlu0 %2069, %v413_v6   ;;  %v158_v5 = vld [vmem:[%s4369_s1 + $0x498] sm:$0xff] }
 0x1d4   :  { %v1185_v10 = vpop.permute.xlu2 %1184 }
 0x1d5   :  { %v1750_v11 = vmul.f32 %v1185_v10, %v154_v7  ;;  %v1135_v12 = vpop.permute.xlu1 %1134  ;;  %v1130_v13 = vpop.permute.xlu0 %1129 }
 0x1d6   :  { %v1740_v14 = vmul.f32 %v1135_v12, %v144_v8  ;;  %v1739_v15 = vmul.f32 %v1130_v13, %v143_v9  ;;  %v433_v12 = vld [vmem:[%s4368_s0 + $0x610] sm:$0xff]  ;;  %v432_v13 = vld [vmem:[%s4368_s0 + $0x608] sm:$0xff] }
 0x1d7   :  { %1979 = vst.msk [vmem:[%s4370_s2 + $0x478] sm:$0xff] %vm1835_vm0, %v1750_v11 }
 0x1d8   :  { %1969 = vst.msk [vmem:[%s4370_s2 + $0x428] sm:$0xff] %vm1835_vm0, %v1740_v14  ;;  %v431_v14 = vld [vmem:[%s4368_s0 + $0x600] sm:$0xff] }
 0x1d9   :  { %1968 = vst.msk [vmem:[%s4370_s2 + $0x420] sm:$0xff] %vm1835_vm0, %v1739_v15  ;;  %v172_v15 = vld [vmem:[%s4369_s1 + $0x508] sm:$0xff] }
 0x1da   :  { %1364 = vperm.xlu2 %2071, %v418_v16   ;;  %v162_v16 = vld [vmem:[%s4369_s1 + $0x4b8] sm:$0xff] }
 0x1db   :  { %1359 = vperm.xlu1 %2070, %v417_v17   ;;  %1354 = vperm.xlu0 %2069, %v416_v18   ;;  %v161_v17 = vld [vmem:[%s4369_s1 + $0x4b0] sm:$0xff] }
 0x1dc   :  { %v1200_v22 = vpop.permute.xlu2 %1199 }
 0x1dd   :  { %v1753_v23 = vmul.f32 %v1200_v22, %v157_v19  ;;  %v1150_v24 = vpop.permute.xlu1 %1149  ;;  %v1145_v25 = vpop.permute.xlu0 %1144 }
 0x1de   :  { %v1743_v26 = vmul.f32 %v1150_v24, %v147_v20  ;;  %v1742_v27 = vmul.f32 %v1145_v25, %v146_v21  ;;  %v436_v24 = vld [vmem:[%s4368_s0 + $0x628] sm:$0xff]  ;;  %v435_v25 = vld [vmem:[%s4368_s0 + $0x620] sm:$0xff] }
 0x1df   :  { %1982 = vst.msk [vmem:[%s4370_s2 + $0x490] sm:$0xff] %vm1835_vm0, %v1753_v23 }
 0x1e0   :  { %1972 = vst.msk [vmem:[%s4370_s2 + $0x440] sm:$0xff] %vm1835_vm0, %v1743_v26  ;;  %v434_v26 = vld [vmem:[%s4368_s0 + $0x618] sm:$0xff] }
 0x1e1   :  { %1971 = vst.msk [vmem:[%s4370_s2 + $0x438] sm:$0xff] %vm1835_vm0, %v1742_v27  ;;  %v175_v27 = vld [vmem:[%s4369_s1 + $0x520] sm:$0xff] }
 0x1e2   :  { %1379 = vperm.xlu2 %2071, %v421_v28   ;;  %v165_v28 = vld [vmem:[%s4369_s1 + $0x4d0] sm:$0xff] }
 0x1e3   :  { %1374 = vperm.xlu1 %2070, %v420_v29   ;;  %1369 = vperm.xlu0 %2069, %v419_v30   ;;  %v164_v29 = vld [vmem:[%s4369_s1 + $0x4c8] sm:$0xff] }
 0x1e4   :  { %v1215_v34 = vpop.permute.xlu2 %1214 }
 0x1e5   :  { %v1756_v35 = vmul.f32 %v1215_v34, %v160_v31  ;;  %v1165_v36 = vpop.permute.xlu1 %1164  ;;  %v1160_v37 = vpop.permute.xlu0 %1159 }
 0x1e6   :  { %v1746_v38 = vmul.f32 %v1165_v36, %v150_v32  ;;  %v1745_v39 = vmul.f32 %v1160_v37, %v149_v33  ;;  %v439_v36 = vld [vmem:[%s4368_s0 + $0x640] sm:$0xff]  ;;  %v438_v37 = vld [vmem:[%s4368_s0 + $0x638] sm:$0xff] }
 0x1e7   :  { %1985 = vst.msk [vmem:[%s4370_s2 + $0x4a8] sm:$0xff] %vm1835_vm0, %v1756_v35 }
 0x1e8   :  { %1975 = vst.msk [vmem:[%s4370_s2 + $0x458] sm:$0xff] %vm1835_vm0, %v1746_v38  ;;  %v437_v38 = vld [vmem:[%s4368_s0 + $0x630] sm:$0xff] }
 0x1e9   :  { %1974 = vst.msk [vmem:[%s4370_s2 + $0x450] sm:$0xff] %vm1835_vm0, %v1745_v39  ;;  %v178_v39 = vld [vmem:[%s4369_s1 + $0x538] sm:$0xff] }
 0x1ea   :  { %1394 = vperm.xlu2 %2071, %v424_v40   ;;  %v168_v40 = vld [vmem:[%s4369_s1 + $0x4e8] sm:$0xff] }
 0x1eb   :  { %1389 = vperm.xlu1 %2070, %v423_v41   ;;  %1384 = vperm.xlu0 %2069, %v422_v42   ;;  %v167_v41 = vld [vmem:[%s4369_s1 + $0x4e0] sm:$0xff] }
 0x1ec   :  { %v1230_v46 = vpop.permute.xlu2 %1229 }
 0x1ed   :  { %v1759_v47 = vmul.f32 %v1230_v46, %v163_v43  ;;  %v1180_v48 = vpop.permute.xlu1 %1179  ;;  %v1175_v49 = vpop.permute.xlu0 %1174 }
 0x1ee   :  { %v1749_v50 = vmul.f32 %v1180_v48, %v153_v44  ;;  %v1748_v51 = vmul.f32 %v1175_v49, %v152_v45  ;;  %v442_v48 = vld [vmem:[%s4368_s0 + $0x658] sm:$0xff]  ;;  %v441_v49 = vld [vmem:[%s4368_s0 + $0x650] sm:$0xff] }
 0x1ef   :  { %1988 = vst.msk [vmem:[%s4370_s2 + $0x4c0] sm:$0xff] %vm1835_vm0, %v1759_v47 }
 0x1f0   :  { %1978 = vst.msk [vmem:[%s4370_s2 + $0x470] sm:$0xff] %vm1835_vm0, %v1749_v50  ;;  %v440_v50 = vld [vmem:[%s4368_s0 + $0x648] sm:$0xff] }
 0x1f1   :  { %1977 = vst.msk [vmem:[%s4370_s2 + $0x468] sm:$0xff] %vm1835_vm0, %v1748_v51  ;;  %v181_v51 = vld [vmem:[%s4369_s1 + $0x550] sm:$0xff] }
 0x1f2   :  { %1409 = vperm.xlu2 %2071, %v427_v52   ;;  %v171_v52 = vld [vmem:[%s4369_s1 + $0x500] sm:$0xff] }
 0x1f3   :  { %1404 = vperm.xlu1 %2070, %v426_v53   ;;  %1399 = vperm.xlu0 %2069, %v425_v54   ;;  %v170_v53 = vld [vmem:[%s4369_s1 + $0x4f8] sm:$0xff] }
 0x1f4   :  { %v1245_v58 = vpop.permute.xlu2 %1244 }
 0x1f5   :  { %v1762_v59 = vmul.f32 %v1245_v58, %v166_v55  ;;  %v1195_v60 = vpop.permute.xlu1 %1194  ;;  %v1190_v61 = vpop.permute.xlu0 %1189 }
 0x1f6   :  { %v1752_v62 = vmul.f32 %v1195_v60, %v156_v56  ;;  %v1751_v63 = vmul.f32 %v1190_v61, %v155_v57  ;;  %v445_v60 = vld [vmem:[%s4368_s0 + $0x670] sm:$0xff]  ;;  %v444_v61 = vld [vmem:[%s4368_s0 + $0x668] sm:$0xff] }
 0x1f7   :  { %1991 = vst.msk [vmem:[%s4370_s2 + $0x4d8] sm:$0xff] %vm1835_vm0, %v1762_v59 }
 0x1f8   :  { %1981 = vst.msk [vmem:[%s4370_s2 + $0x488] sm:$0xff] %vm1835_vm0, %v1752_v62  ;;  %v443_v62 = vld [vmem:[%s4368_s0 + $0x660] sm:$0xff] }
 0x1f9   :  { %1980 = vst.msk [vmem:[%s4370_s2 + $0x480] sm:$0xff] %vm1835_vm0, %v1751_v63  ;;  %v184_v63 = vld [vmem:[%s4369_s1 + $0x568] sm:$0xff] }
 0x1fa   :  { %1424 = vperm.xlu2 %2071, %v430_v0   ;;  %v174_v0 = vld [vmem:[%s4369_s1 + $0x518] sm:$0xff] }
 0x1fb   :  { %1419 = vperm.xlu1 %2070, %v429_v1   ;;  %1414 = vperm.xlu0 %2069, %v428_v2   ;;  %v173_v1 = vld [vmem:[%s4369_s1 + $0x510] sm:$0xff] }
 0x1fc   :  { %v1260_v6 = vpop.permute.xlu2 %1259 }
 0x1fd   :  { %v1765_v7 = vmul.f32 %v1260_v6, %v169_v3  ;;  %v1210_v8 = vpop.permute.xlu1 %1209  ;;  %v1205_v9 = vpop.permute.xlu0 %1204 }
 0x1fe   :  { %v1755_v10 = vmul.f32 %v1210_v8, %v159_v4  ;;  %v1754_v11 = vmul.f32 %v1205_v9, %v158_v5  ;;  %v448_v8 = vld [vmem:[%s4368_s0 + $0x688] sm:$0xff]  ;;  %v447_v9 = vld [vmem:[%s4368_s0 + $0x680] sm:$0xff] }
 0x1ff   :  { %1994 = vst.msk [vmem:[%s4370_s2 + $0x4f0] sm:$0xff] %vm1835_vm0, %v1765_v7 }
 0x200   :  { %1984 = vst.msk [vmem:[%s4370_s2 + $0x4a0] sm:$0xff] %vm1835_vm0, %v1755_v10  ;;  %v446_v10 = vld [vmem:[%s4368_s0 + $0x678] sm:$0xff] }
 0x201   :  { %1983 = vst.msk [vmem:[%s4370_s2 + $0x498] sm:$0xff] %vm1835_vm0, %v1754_v11  ;;  %v187_v11 = vld [vmem:[%s4369_s1 + $0x580] sm:$0xff] }
 0x202   :  { %1439 = vperm.xlu2 %2071, %v433_v12   ;;  %v177_v12 = vld [vmem:[%s4369_s1 + $0x530] sm:$0xff] }
 0x203   :  { %1434 = vperm.xlu1 %2070, %v432_v13   ;;  %1429 = vperm.xlu0 %2069, %v431_v14   ;;  %v176_v13 = vld [vmem:[%s4369_s1 + $0x528] sm:$0xff] }
 0x204   :  { %v1275_v18 = vpop.permute.xlu2 %1274 }
 0x205   :  { %v1768_v19 = vmul.f32 %v1275_v18, %v172_v15  ;;  %v1225_v20 = vpop.permute.xlu1 %1224  ;;  %v1220_v21 = vpop.permute.xlu0 %1219 }
 0x206   :  { %v1758_v22 = vmul.f32 %v1225_v20, %v162_v16  ;;  %v1757_v23 = vmul.f32 %v1220_v21, %v161_v17  ;;  %v451_v20 = vld [vmem:[%s4368_s0 + $0x6a0] sm:$0xff]  ;;  %v450_v21 = vld [vmem:[%s4368_s0 + $0x698] sm:$0xff] }
 0x207   :  { %1997 = vst.msk [vmem:[%s4370_s2 + $0x508] sm:$0xff] %vm1835_vm0, %v1768_v19 }
 0x208   :  { %1987 = vst.msk [vmem:[%s4370_s2 + $0x4b8] sm:$0xff] %vm1835_vm0, %v1758_v22  ;;  %v449_v22 = vld [vmem:[%s4368_s0 + $0x690] sm:$0xff] }
 0x209   :  { %1986 = vst.msk [vmem:[%s4370_s2 + $0x4b0] sm:$0xff] %vm1835_vm0, %v1757_v23  ;;  %v190_v23 = vld [vmem:[%s4369_s1 + $0x598] sm:$0xff] }
 0x20a   :  { %1454 = vperm.xlu2 %2071, %v436_v24   ;;  %v180_v24 = vld [vmem:[%s4369_s1 + $0x548] sm:$0xff] }
 0x20b   :  { %1449 = vperm.xlu1 %2070, %v435_v25   ;;  %1444 = vperm.xlu0 %2069, %v434_v26   ;;  %v179_v25 = vld [vmem:[%s4369_s1 + $0x540] sm:$0xff] }
 0x20c   :  { %v1290_v30 = vpop.permute.xlu2 %1289 }
 0x20d   :  { %v1771_v31 = vmul.f32 %v1290_v30, %v175_v27  ;;  %v1240_v32 = vpop.permute.xlu1 %1239  ;;  %v1235_v33 = vpop.permute.xlu0 %1234 }
 0x20e   :  { %v1761_v34 = vmul.f32 %v1240_v32, %v165_v28  ;;  %v1760_v35 = vmul.f32 %v1235_v33, %v164_v29  ;;  %v454_v32 = vld [vmem:[%s4368_s0 + $0x6b8] sm:$0xff]  ;;  %v453_v33 = vld [vmem:[%s4368_s0 + $0x6b0] sm:$0xff] }
 0x20f   :  { %2000 = vst.msk [vmem:[%s4370_s2 + $0x520] sm:$0xff] %vm1835_vm0, %v1771_v31 }
 0x210   :  { %1990 = vst.msk [vmem:[%s4370_s2 + $0x4d0] sm:$0xff] %vm1835_vm0, %v1761_v34  ;;  %v452_v34 = vld [vmem:[%s4368_s0 + $0x6a8] sm:$0xff] }
 0x211   :  { %1989 = vst.msk [vmem:[%s4370_s2 + $0x4c8] sm:$0xff] %vm1835_vm0, %v1760_v35  ;;  %v193_v35 = vld [vmem:[%s4369_s1 + $0x5b0] sm:$0xff] }
 0x212   :  { %1469 = vperm.xlu2 %2071, %v439_v36   ;;  %v183_v36 = vld [vmem:[%s4369_s1 + $0x560] sm:$0xff] }
 0x213   :  { %1464 = vperm.xlu1 %2070, %v438_v37   ;;  %1459 = vperm.xlu0 %2069, %v437_v38   ;;  %v182_v37 = vld [vmem:[%s4369_s1 + $0x558] sm:$0xff] }
 0x214   :  { %v1305_v42 = vpop.permute.xlu2 %1304 }
 0x215   :  { %v1774_v43 = vmul.f32 %v1305_v42, %v178_v39  ;;  %v1255_v44 = vpop.permute.xlu1 %1254  ;;  %v1250_v45 = vpop.permute.xlu0 %1249 }
 0x216   :  { %v1764_v46 = vmul.f32 %v1255_v44, %v168_v40  ;;  %v1763_v47 = vmul.f32 %v1250_v45, %v167_v41  ;;  %v457_v44 = vld [vmem:[%s4368_s0 + $0x6d0] sm:$0xff]  ;;  %v456_v45 = vld [vmem:[%s4368_s0 + $0x6c8] sm:$0xff] }
 0x217   :  { %2003 = vst.msk [vmem:[%s4370_s2 + $0x538] sm:$0xff] %vm1835_vm0, %v1774_v43 }
 0x218   :  { %1993 = vst.msk [vmem:[%s4370_s2 + $0x4e8] sm:$0xff] %vm1835_vm0, %v1764_v46  ;;  %v455_v46 = vld [vmem:[%s4368_s0 + $0x6c0] sm:$0xff] }
 0x219   :  { %1992 = vst.msk [vmem:[%s4370_s2 + $0x4e0] sm:$0xff] %vm1835_vm0, %v1763_v47  ;;  %v196_v47 = vld [vmem:[%s4369_s1 + $0x5c8] sm:$0xff] }
 0x21a   :  { %1484 = vperm.xlu2 %2071, %v442_v48   ;;  %v186_v48 = vld [vmem:[%s4369_s1 + $0x578] sm:$0xff] }
 0x21b   :  { %1479 = vperm.xlu1 %2070, %v441_v49   ;;  %1474 = vperm.xlu0 %2069, %v440_v50   ;;  %v185_v49 = vld [vmem:[%s4369_s1 + $0x570] sm:$0xff] }
 0x21c   :  { %v1320_v54 = vpop.permute.xlu2 %1319 }
 0x21d   :  { %v1777_v55 = vmul.f32 %v1320_v54, %v181_v51  ;;  %v1270_v56 = vpop.permute.xlu1 %1269  ;;  %v1265_v57 = vpop.permute.xlu0 %1264 }
 0x21e   :  { %v1767_v58 = vmul.f32 %v1270_v56, %v171_v52  ;;  %v1766_v59 = vmul.f32 %v1265_v57, %v170_v53  ;;  %v460_v56 = vld [vmem:[%s4368_s0 + $0x6e8] sm:$0xff]  ;;  %v459_v57 = vld [vmem:[%s4368_s0 + $0x6e0] sm:$0xff] }
 0x21f   :  { %2006 = vst.msk [vmem:[%s4370_s2 + $0x550] sm:$0xff] %vm1835_vm0, %v1777_v55 }
 0x220   :  { %1996 = vst.msk [vmem:[%s4370_s2 + $0x500] sm:$0xff] %vm1835_vm0, %v1767_v58  ;;  %v458_v58 = vld [vmem:[%s4368_s0 + $0x6d8] sm:$0xff] }
 0x221   :  { %1995 = vst.msk [vmem:[%s4370_s2 + $0x4f8] sm:$0xff] %vm1835_vm0, %v1766_v59  ;;  %v199_v59 = vld [vmem:[%s4369_s1 + $0x5e0] sm:$0xff] }
 0x222   :  { %1499 = vperm.xlu2 %2071, %v445_v60   ;;  %v189_v60 = vld [vmem:[%s4369_s1 + $0x590] sm:$0xff] }
 0x223   :  { %1494 = vperm.xlu1 %2070, %v444_v61   ;;  %1489 = vperm.xlu0 %2069, %v443_v62   ;;  %v188_v61 = vld [vmem:[%s4369_s1 + $0x588] sm:$0xff] }
 0x224   :  { %v1335_v2 = vpop.permute.xlu2 %1334 }
 0x225   :  { %v1780_v3 = vmul.f32 %v1335_v2, %v184_v63  ;;  %v1285_v4 = vpop.permute.xlu1 %1284  ;;  %v1280_v5 = vpop.permute.xlu0 %1279 }
 0x226   :  { %v1770_v6 = vmul.f32 %v1285_v4, %v174_v0  ;;  %v1769_v7 = vmul.f32 %v1280_v5, %v173_v1  ;;  %v463_v4 = vld [vmem:[%s4368_s0 + $0x700] sm:$0xff]  ;;  %v462_v5 = vld [vmem:[%s4368_s0 + $0x6f8] sm:$0xff] }
 0x227   :  { %2009 = vst.msk [vmem:[%s4370_s2 + $0x568] sm:$0xff] %vm1835_vm0, %v1780_v3 }
 0x228   :  { %1999 = vst.msk [vmem:[%s4370_s2 + $0x518] sm:$0xff] %vm1835_vm0, %v1770_v6  ;;  %v461_v6 = vld [vmem:[%s4368_s0 + $0x6f0] sm:$0xff] }
 0x229   :  { %1998 = vst.msk [vmem:[%s4370_s2 + $0x510] sm:$0xff] %vm1835_vm0, %v1769_v7  ;;  %v202_v7 = vld [vmem:[%s4369_s1 + $0x5f8] sm:$0xff] }
 0x22a   :  { %1514 = vperm.xlu2 %2071, %v448_v8   ;;  %v192_v8 = vld [vmem:[%s4369_s1 + $0x5a8] sm:$0xff] }
 0x22b   :  { %1509 = vperm.xlu1 %2070, %v447_v9   ;;  %1504 = vperm.xlu0 %2069, %v446_v10   ;;  %v191_v9 = vld [vmem:[%s4369_s1 + $0x5a0] sm:$0xff] }
 0x22c   :  { %v1350_v14 = vpop.permute.xlu2 %1349 }
 0x22d   :  { %v1783_v15 = vmul.f32 %v1350_v14, %v187_v11  ;;  %v1300_v16 = vpop.permute.xlu1 %1299  ;;  %v1295_v17 = vpop.permute.xlu0 %1294 }
 0x22e   :  { %v1773_v18 = vmul.f32 %v1300_v16, %v177_v12  ;;  %v1772_v19 = vmul.f32 %v1295_v17, %v176_v13  ;;  %v466_v16 = vld [vmem:[%s4368_s0 + $0x718] sm:$0xff]  ;;  %v465_v17 = vld [vmem:[%s4368_s0 + $0x710] sm:$0xff] }
 0x22f   :  { %2012 = vst.msk [vmem:[%s4370_s2 + $0x580] sm:$0xff] %vm1835_vm0, %v1783_v15 }
 0x230   :  { %2002 = vst.msk [vmem:[%s4370_s2 + $0x530] sm:$0xff] %vm1835_vm0, %v1773_v18  ;;  %v464_v18 = vld [vmem:[%s4368_s0 + $0x708] sm:$0xff] }
 0x231   :  { %2001 = vst.msk [vmem:[%s4370_s2 + $0x528] sm:$0xff] %vm1835_vm0, %v1772_v19  ;;  %v205_v19 = vld [vmem:[%s4369_s1 + $0x610] sm:$0xff] }
 0x232   :  { %1529 = vperm.xlu2 %2071, %v451_v20   ;;  %v195_v20 = vld [vmem:[%s4369_s1 + $0x5c0] sm:$0xff] }
 0x233   :  { %1524 = vperm.xlu1 %2070, %v450_v21   ;;  %1519 = vperm.xlu0 %2069, %v449_v22   ;;  %v194_v21 = vld [vmem:[%s4369_s1 + $0x5b8] sm:$0xff] }
 0x234   :  { %v1365_v26 = vpop.permute.xlu2 %1364 }
 0x235   :  { %v1786_v27 = vmul.f32 %v1365_v26, %v190_v23  ;;  %v1315_v28 = vpop.permute.xlu1 %1314  ;;  %v1310_v29 = vpop.permute.xlu0 %1309 }
 0x236   :  { %v1776_v30 = vmul.f32 %v1315_v28, %v180_v24  ;;  %v1775_v31 = vmul.f32 %v1310_v29, %v179_v25  ;;  %v208_v28 = vld [vmem:[%s4369_s1 + $0x628] sm:$0xff]  ;;  %v198_v29 = vld [vmem:[%s4369_s1 + $0x5d8] sm:$0xff] }
 0x237   :  { %2015 = vst.msk [vmem:[%s4370_s2 + $0x598] sm:$0xff] %vm1835_vm0, %v1786_v27 }
 0x238   :  { %2005 = vst.msk [vmem:[%s4370_s2 + $0x548] sm:$0xff] %vm1835_vm0, %v1776_v30  ;;  %v197_v30 = vld [vmem:[%s4369_s1 + $0x5d0] sm:$0xff] }
 0x239   :  { %2004 = vst.msk [vmem:[%s4370_s2 + $0x540] sm:$0xff] %vm1835_vm0, %v1775_v31 }
 0x23a   :  { %1544 = vperm.xlu2 %2071, %v454_v32  }
 0x23b   :  { %1539 = vperm.xlu1 %2070, %v453_v33   ;;  %1534 = vperm.xlu0 %2069, %v452_v34  }
 0x23c   :  { %v1380_v38 = vpop.permute.xlu2 %1379 }
 0x23d   :  { %v1789_v39 = vmul.f32 %v1380_v38, %v193_v35  ;;  %v1330_v40 = vpop.permute.xlu1 %1329  ;;  %v1325_v41 = vpop.permute.xlu0 %1324  ;;  %v201_v38 = vld [vmem:[%s4369_s1 + $0x5f0] sm:$0xff] }
 0x23e   :  { %v1779_v42 = vmul.f32 %v1330_v40, %v183_v36  ;;  %v1778_v43 = vmul.f32 %v1325_v41, %v182_v37  ;;  %v211_v37 = vld [vmem:[%s4369_s1 + $0x640] sm:$0xff] }
 0x23f   :  { %2018 = vst.msk [vmem:[%s4370_s2 + $0x5b0] sm:$0xff] %vm1835_vm0, %v1789_v39  ;;  %v200_v39 = vld [vmem:[%s4369_s1 + $0x5e8] sm:$0xff] }
 0x240   :  { %2008 = vst.msk [vmem:[%s4370_s2 + $0x560] sm:$0xff] %vm1835_vm0, %v1779_v42 }
 0x241   :  { %2007 = vst.msk [vmem:[%s4370_s2 + $0x558] sm:$0xff] %vm1835_vm0, %v1778_v43 }
 0x242   :  { %1559 = vperm.xlu2 %2071, %v457_v44  }
 0x243   :  { %1554 = vperm.xlu1 %2070, %v456_v45   ;;  %1549 = vperm.xlu0 %2069, %v455_v46   ;;  %v214_v46 = vld [vmem:[%s4369_s1 + $0x658] sm:$0xff] }
 0x244   :  { %v1395_v50 = vpop.permute.xlu2 %1394 }
 0x245   :  { %v1792_v51 = vmul.f32 %v1395_v50, %v196_v47  ;;  %v1345_v52 = vpop.permute.xlu1 %1344  ;;  %v1340_v53 = vpop.permute.xlu0 %1339  ;;  %v204_v47 = vld [vmem:[%s4369_s1 + $0x608] sm:$0xff] }
 0x246   :  { %v1782_v54 = vmul.f32 %v1345_v52, %v186_v48  ;;  %v1781_v55 = vmul.f32 %v1340_v53, %v185_v49  ;;  %v203_v48 = vld [vmem:[%s4369_s1 + $0x600] sm:$0xff] }
 0x247   :  { %2021 = vst.msk [vmem:[%s4370_s2 + $0x5c8] sm:$0xff] %vm1835_vm0, %v1792_v51 }
 0x248   :  { %2011 = vst.msk [vmem:[%s4370_s2 + $0x578] sm:$0xff] %vm1835_vm0, %v1782_v54 }
 0x249   :  { %2010 = vst.msk [vmem:[%s4370_s2 + $0x570] sm:$0xff] %vm1835_vm0, %v1781_v55  ;;  %v217_v55 = vld [vmem:[%s4369_s1 + $0x670] sm:$0xff] }
 0x24a   :  { %1574 = vperm.xlu2 %2071, %v460_v56   ;;  %v207_v56 = vld [vmem:[%s4369_s1 + $0x620] sm:$0xff] }
 0x24b   :  { %1569 = vperm.xlu1 %2070, %v459_v57   ;;  %1564 = vperm.xlu0 %2069, %v458_v58   ;;  %v206_v57 = vld [vmem:[%s4369_s1 + $0x618] sm:$0xff] }
 0x24c   :  { %v1410_v62 = vpop.permute.xlu2 %1409 }
 0x24d   :  { %v1795_v63 = vmul.f32 %v1410_v62, %v199_v59  ;;  %v1360_v0 = vpop.permute.xlu1 %1359  ;;  %v1355_v1 = vpop.permute.xlu0 %1354 }
 0x24e   :  { %v1785_v2 = vmul.f32 %v1360_v0, %v189_v60  ;;  %v1784_v3 = vmul.f32 %v1355_v1, %v188_v61  ;;  %v220_v0 = vld [vmem:[%s4369_s1 + $0x688] sm:$0xff]  ;;  %v210_v1 = vld [vmem:[%s4369_s1 + $0x638] sm:$0xff] }
 0x24f   :  { %2024 = vst.msk [vmem:[%s4370_s2 + $0x5e0] sm:$0xff] %vm1835_vm0, %v1795_v63 }
 0x250   :  { %2014 = vst.msk [vmem:[%s4370_s2 + $0x590] sm:$0xff] %vm1835_vm0, %v1785_v2  ;;  %v209_v2 = vld [vmem:[%s4369_s1 + $0x630] sm:$0xff] }
 0x251   :  { %2013 = vst.msk [vmem:[%s4370_s2 + $0x588] sm:$0xff] %vm1835_vm0, %v1784_v3 }
 0x252   :  { %1589 = vperm.xlu2 %2071, %v463_v4  }
 0x253   :  { %1584 = vperm.xlu1 %2070, %v462_v5   ;;  %1579 = vperm.xlu0 %2069, %v461_v6  }
 0x254   :  { %v1425_v10 = vpop.permute.xlu2 %1424 }
 0x255   :  { %v1798_v11 = vmul.f32 %v1425_v10, %v202_v7  ;;  %v1375_v12 = vpop.permute.xlu1 %1374  ;;  %v1370_v13 = vpop.permute.xlu0 %1369  ;;  %v213_v10 = vld [vmem:[%s4369_s1 + $0x650] sm:$0xff] }
 0x256   :  { %v1788_v14 = vmul.f32 %v1375_v12, %v192_v8  ;;  %v1787_v15 = vmul.f32 %v1370_v13, %v191_v9  ;;  %v223_v9 = vld [vmem:[%s4369_s1 + $0x6a0] sm:$0xff] }
 0x257   :  { %2027 = vst.msk [vmem:[%s4370_s2 + $0x5f8] sm:$0xff] %vm1835_vm0, %v1798_v11  ;;  %v212_v11 = vld [vmem:[%s4369_s1 + $0x648] sm:$0xff] }
 0x258   :  { %2017 = vst.msk [vmem:[%s4370_s2 + $0x5a8] sm:$0xff] %vm1835_vm0, %v1788_v14 }
 0x259   :  { %2016 = vst.msk [vmem:[%s4370_s2 + $0x5a0] sm:$0xff] %vm1835_vm0, %v1787_v15 }
 0x25a   :  { %1604 = vperm.xlu2 %2071, %v466_v16  }
 0x25b   :  { %1599 = vperm.xlu1 %2070, %v465_v17   ;;  %1594 = vperm.xlu0 %2069, %v464_v18   ;;  %v226_v18 = vld [vmem:[%s4369_s1 + $0x6b8] sm:$0xff] }
 0x25c   :  { %v1440_v22 = vpop.permute.xlu2 %1439 }
 0x25d   :  { %v1801_v23 = vmul.f32 %v1440_v22, %v205_v19  ;;  %v1390_v24 = vpop.permute.xlu1 %1389  ;;  %v1385_v25 = vpop.permute.xlu0 %1384  ;;  %v216_v19 = vld [vmem:[%s4369_s1 + $0x668] sm:$0xff] }
 0x25e   :  { %v1791_v26 = vmul.f32 %v1390_v24, %v195_v20  ;;  %v1790_v27 = vmul.f32 %v1385_v25, %v194_v21  ;;  %v215_v20 = vld [vmem:[%s4369_s1 + $0x660] sm:$0xff] }
 0x25f   :  { %2030 = vst.msk [vmem:[%s4370_s2 + $0x610] sm:$0xff] %vm1835_vm0, %v1801_v23 }
 0x260   :  { %2020 = vst.msk [vmem:[%s4370_s2 + $0x5c0] sm:$0xff] %vm1835_vm0, %v1791_v26 }
 0x261   :  { %2019 = vst.msk [vmem:[%s4370_s2 + $0x5b8] sm:$0xff] %vm1835_vm0, %v1790_v27  ;;  %v229_v27 = vld [vmem:[%s4369_s1 + $0x6d0] sm:$0xff] }
 0x264   :  { %v1455_v31 = vpop.permute.xlu2 %1454 }
 0x265   :  { %v1804_v32 = vmul.f32 %v1455_v31, %v208_v28  ;;  %v1405_v33 = vpop.permute.xlu1 %1404  ;;  %v1400_v34 = vpop.permute.xlu0 %1399  ;;  %v219_v28 = vld [vmem:[%s4369_s1 + $0x680] sm:$0xff] }
 0x266   :  { %v1794_v35 = vmul.f32 %v1405_v33, %v198_v29  ;;  %v1793_v36 = vmul.f32 %v1400_v34, %v197_v30  ;;  %v218_v29 = vld [vmem:[%s4369_s1 + $0x678] sm:$0xff] }
 0x267   :  { %2033 = vst.msk [vmem:[%s4370_s2 + $0x628] sm:$0xff] %vm1835_vm0, %v1804_v32 }
 0x268   :  { %2023 = vst.msk [vmem:[%s4370_s2 + $0x5d8] sm:$0xff] %vm1835_vm0, %v1794_v35 }
 0x269   :  { %2022 = vst.msk [vmem:[%s4370_s2 + $0x5d0] sm:$0xff] %vm1835_vm0, %v1793_v36  ;;  %v232_v36 = vld [vmem:[%s4369_s1 + $0x6e8] sm:$0xff] }
 0x26c   :  { %v1470_v40 = vpop.permute.xlu2 %1469 }
 0x26d   :  { %v1807_v41 = vmul.f32 %v1470_v40, %v211_v37  ;;  %v1420_v42 = vpop.permute.xlu1 %1419  ;;  %v1415_v43 = vpop.permute.xlu0 %1414  ;;  %v222_v37 = vld [vmem:[%s4369_s1 + $0x698] sm:$0xff] }
 0x26e   :  { %v1797_v44 = vmul.f32 %v1420_v42, %v201_v38  ;;  %v1796_v45 = vmul.f32 %v1415_v43, %v200_v39  ;;  %v221_v38 = vld [vmem:[%s4369_s1 + $0x690] sm:$0xff] }
 0x26f   :  { %2036 = vst.msk [vmem:[%s4370_s2 + $0x640] sm:$0xff] %vm1835_vm0, %v1807_v41 }
 0x270   :  { %2026 = vst.msk [vmem:[%s4370_s2 + $0x5f0] sm:$0xff] %vm1835_vm0, %v1797_v44 }
 0x271   :  { %2025 = vst.msk [vmem:[%s4370_s2 + $0x5e8] sm:$0xff] %vm1835_vm0, %v1796_v45  ;;  %v235_v45 = vld [vmem:[%s4369_s1 + $0x700] sm:$0xff] }
 0x274   :  { %v1485_v49 = vpop.permute.xlu2 %1484 }
 0x275   :  { %v1810_v50 = vmul.f32 %v1485_v49, %v214_v46  ;;  %v1435_v51 = vpop.permute.xlu1 %1434  ;;  %v1430_v52 = vpop.permute.xlu0 %1429  ;;  %v225_v46 = vld [vmem:[%s4369_s1 + $0x6b0] sm:$0xff] }
 0x276   :  { %v1800_v53 = vmul.f32 %v1435_v51, %v204_v47  ;;  %v1799_v54 = vmul.f32 %v1430_v52, %v203_v48  ;;  %v224_v47 = vld [vmem:[%s4369_s1 + $0x6a8] sm:$0xff] }
 0x277   :  { %2039 = vst.msk [vmem:[%s4370_s2 + $0x658] sm:$0xff] %vm1835_vm0, %v1810_v50 }
 0x278   :  { %2029 = vst.msk [vmem:[%s4370_s2 + $0x608] sm:$0xff] %vm1835_vm0, %v1800_v53 }
 0x279   :  { %2028 = vst.msk [vmem:[%s4370_s2 + $0x600] sm:$0xff] %vm1835_vm0, %v1799_v54  ;;  %v238_v54 = vld [vmem:[%s4369_s1 + $0x718] sm:$0xff] }
 0x27c   :  { %v1500_v58 = vpop.permute.xlu2 %1499 }
 0x27d   :  { %v1813_v59 = vmul.f32 %v1500_v58, %v217_v55  ;;  %v1450_v60 = vpop.permute.xlu1 %1449  ;;  %v1445_v61 = vpop.permute.xlu0 %1444  ;;  %v228_v55 = vld [vmem:[%s4369_s1 + $0x6c8] sm:$0xff] }
 0x27e   :  { %v1803_v62 = vmul.f32 %v1450_v60, %v207_v56  ;;  %v1802_v63 = vmul.f32 %v1445_v61, %v206_v57  ;;  %v227_v56 = vld [vmem:[%s4369_s1 + $0x6c0] sm:$0xff] }
 0x27f   :  { %2042 = vst.msk [vmem:[%s4370_s2 + $0x670] sm:$0xff] %vm1835_vm0, %v1813_v59 }
 0x280   :  { %2032 = vst.msk [vmem:[%s4370_s2 + $0x620] sm:$0xff] %vm1835_vm0, %v1803_v62 }
 0x281   :  { %2031 = vst.msk [vmem:[%s4370_s2 + $0x618] sm:$0xff] %vm1835_vm0, %v1802_v63  ;;  %v231_v63 = vld [vmem:[%s4369_s1 + $0x6e0] sm:$0xff] }
 0x284   :  { %v1515_v3 = vpop.permute.xlu2 %1514 }
 0x285   :  { %v1816_v4 = vmul.f32 %v1515_v3, %v220_v0  ;;  %v1465_v5 = vpop.permute.xlu1 %1464  ;;  %v1460_v6 = vpop.permute.xlu0 %1459  ;;  %v230_v0 = vld [vmem:[%s4369_s1 + $0x6d8] sm:$0xff] }
 0x286   :  { %v1806_v7 = vmul.f32 %v1465_v5, %v210_v1  ;;  %v1805_v8 = vmul.f32 %v1460_v6, %v209_v2  ;;  %v234_v5 = vld [vmem:[%s4369_s1 + $0x6f8] sm:$0xff]  ;;  %v233_v6 = vld [vmem:[%s4369_s1 + $0x6f0] sm:$0xff] }
 0x287   :  { %2045 = vst.msk [vmem:[%s4370_s2 + $0x688] sm:$0xff] %vm1835_vm0, %v1816_v4 }
 0x288   :  { %2035 = vst.msk [vmem:[%s4370_s2 + $0x638] sm:$0xff] %vm1835_vm0, %v1806_v7 }
 0x289   :  { %2034 = vst.msk [vmem:[%s4370_s2 + $0x630] sm:$0xff] %vm1835_vm0, %v1805_v8 }
 0x28c   :  { %v1530_v12 = vpop.permute.xlu2 %1529 }
 0x28d   :  { %v1819_v13 = vmul.f32 %v1530_v12, %v223_v9  ;;  %v1480_v14 = vpop.permute.xlu1 %1479  ;;  %v1475_v15 = vpop.permute.xlu0 %1474  ;;  %v236_v12 = vld [vmem:[%s4369_s1 + $0x708] sm:$0xff] }
 0x28e   :  { %v1809_v16 = vmul.f32 %v1480_v14, %v213_v10  ;;  %v1808_v17 = vmul.f32 %v1475_v15, %v212_v11  ;;  %v237_v11 = vld [vmem:[%s4369_s1 + $0x710] sm:$0xff] }
 0x28f   :  { %2048 = vst.msk [vmem:[%s4370_s2 + $0x6a0] sm:$0xff] %vm1835_vm0, %v1819_v13 }
 0x290   :  { %2038 = vst.msk [vmem:[%s4370_s2 + $0x650] sm:$0xff] %vm1835_vm0, %v1809_v16 }
 0x291   :  { %2037 = vst.msk [vmem:[%s4370_s2 + $0x648] sm:$0xff] %vm1835_vm0, %v1808_v17 }
 0x294   :  { %v1545_v21 = vpop.permute.xlu2 %1544 }
 0x295   :  { %v1822_v22 = vmul.f32 %v1545_v21, %v226_v18  ;;  %v1495_v23 = vpop.permute.xlu1 %1494  ;;  %v1490_v24 = vpop.permute.xlu0 %1489 }
 0x296   :  { %v1812_v25 = vmul.f32 %v1495_v23, %v216_v19  ;;  %v1811_v26 = vmul.f32 %v1490_v24, %v215_v20 }
 0x297   :  { %2051 = vst.msk [vmem:[%s4370_s2 + $0x6b8] sm:$0xff] %vm1835_vm0, %v1822_v22 }
 0x298   :  { %2041 = vst.msk [vmem:[%s4370_s2 + $0x668] sm:$0xff] %vm1835_vm0, %v1812_v25 }
 0x299   :  { %2040 = vst.msk [vmem:[%s4370_s2 + $0x660] sm:$0xff] %vm1835_vm0, %v1811_v26 }
 0x29c   :  { %v1560_v30 = vpop.permute.xlu2 %1559 }
 0x29d   :  { %v1825_v31 = vmul.f32 %v1560_v30, %v229_v27  ;;  %v1510_v32 = vpop.permute.xlu1 %1509  ;;  %v1505_v33 = vpop.permute.xlu0 %1504 }
 0x29e   :  { %v1815_v34 = vmul.f32 %v1510_v32, %v219_v28  ;;  %v1814_v35 = vmul.f32 %v1505_v33, %v218_v29 }
 0x29f   :  { %2054 = vst.msk [vmem:[%s4370_s2 + $0x6d0] sm:$0xff] %vm1835_vm0, %v1825_v31 }
 0x2a0   :  { %2044 = vst.msk [vmem:[%s4370_s2 + $0x680] sm:$0xff] %vm1835_vm0, %v1815_v34 }
 0x2a1   :  { %2043 = vst.msk [vmem:[%s4370_s2 + $0x678] sm:$0xff] %vm1835_vm0, %v1814_v35 }
 0x2a4   :  { %v1575_v39 = vpop.permute.xlu2 %1574 }
 0x2a5   :  { %v1828_v40 = vmul.f32 %v1575_v39, %v232_v36  ;;  %v1525_v41 = vpop.permute.xlu1 %1524  ;;  %v1520_v42 = vpop.permute.xlu0 %1519 }
 0x2a6   :  { %v1818_v43 = vmul.f32 %v1525_v41, %v222_v37  ;;  %v1817_v44 = vmul.f32 %v1520_v42, %v221_v38 }
 0x2a7   :  { %2057 = vst.msk [vmem:[%s4370_s2 + $0x6e8] sm:$0xff] %vm1835_vm0, %v1828_v40 }
 0x2a8   :  { %2047 = vst.msk [vmem:[%s4370_s2 + $0x698] sm:$0xff] %vm1835_vm0, %v1818_v43 }
 0x2a9   :  { %2046 = vst.msk [vmem:[%s4370_s2 + $0x690] sm:$0xff] %vm1835_vm0, %v1817_v44 }
 0x2ac   :  { %v1590_v48 = vpop.permute.xlu2 %1589 }
 0x2ad   :  { %v1831_v49 = vmul.f32 %v1590_v48, %v235_v45  ;;  %v1540_v50 = vpop.permute.xlu1 %1539  ;;  %v1535_v51 = vpop.permute.xlu0 %1534 }
 0x2ae   :  { %v1821_v52 = vmul.f32 %v1540_v50, %v225_v46  ;;  %v1820_v53 = vmul.f32 %v1535_v51, %v224_v47 }
 0x2af   :  { %2060 = vst.msk [vmem:[%s4370_s2 + $0x700] sm:$0xff] %vm1835_vm0, %v1831_v49 }
 0x2b0   :  { %2050 = vst.msk [vmem:[%s4370_s2 + $0x6b0] sm:$0xff] %vm1835_vm0, %v1821_v52 }
 0x2b1   :  { %2049 = vst.msk [vmem:[%s4370_s2 + $0x6a8] sm:$0xff] %vm1835_vm0, %v1820_v53 }
 0x2b4   :  { %v1605_v57 = vpop.permute.xlu2 %1604 }
 0x2b5   :  { %v1834_v58 = vmul.f32 %v1605_v57, %v238_v54  ;;  %v1555_v59 = vpop.permute.xlu1 %1554  ;;  %v1550_v60 = vpop.permute.xlu0 %1549 }
 0x2b6   :  { %v1824_v61 = vmul.f32 %v1555_v59, %v228_v55  ;;  %v1823_v62 = vmul.f32 %v1550_v60, %v227_v56 }
 0x2b7   :  { %2063 = vst.msk [vmem:[%s4370_s2 + $0x718] sm:$0xff] %vm1835_vm0, %v1834_v58 }
 0x2b8   :  { %2053 = vst.msk [vmem:[%s4370_s2 + $0x6c8] sm:$0xff] %vm1835_vm0, %v1824_v61 }
 0x2b9   :  { %2052 = vst.msk [vmem:[%s4370_s2 + $0x6c0] sm:$0xff] %vm1835_vm0, %v1823_v62 }
 0x2bd   :  { %v1570_v1 = vpop.permute.xlu1 %1569  ;;  %v1565_v2 = vpop.permute.xlu0 %1564 }
 0x2be   :  { %v1827_v3 = vmul.f32 %v1570_v1, %v231_v63  ;;  %v1826_v4 = vmul.f32 %v1565_v2, %v230_v0 }
 0x2c0   :  { %2056 = vst.msk [vmem:[%s4370_s2 + $0x6e0] sm:$0xff] %vm1835_vm0, %v1827_v3 }
 0x2c1   :  { %2055 = vst.msk [vmem:[%s4370_s2 + $0x6d8] sm:$0xff] %vm1835_vm0, %v1826_v4 }
 0x2c5   :  { %v1585_v7 = vpop.permute.xlu1 %1584  ;;  %v1580_v8 = vpop.permute.xlu0 %1579 }
 0x2c6   :  { %v1830_v9 = vmul.f32 %v1585_v7, %v234_v5  ;;  %v1829_v10 = vmul.f32 %v1580_v8, %v233_v6 }
 0x2c8   :  { %2059 = vst.msk [vmem:[%s4370_s2 + $0x6f8] sm:$0xff] %vm1835_vm0, %v1830_v9 }
 0x2c9   :  { %2058 = vst.msk [vmem:[%s4370_s2 + $0x6f0] sm:$0xff] %vm1835_vm0, %v1829_v10 }
 0x2cd   :  { %v1600_v13 = vpop.permute.xlu1 %1599  ;;  %v1595_v14 = vpop.permute.xlu0 %1594 }
 0x2ce   :  { %v1833_v15 = vmul.f32 %v1600_v13, %v237_v11  ;;  %v1832_v16 = vmul.f32 %v1595_v14, %v236_v12 }
 0x2d0   :  { %2062 = vst.msk [vmem:[%s4370_s2 + $0x710] sm:$0xff] %vm1835_vm0, %v1833_v15 }
 0x2d1   :  { %2061 = vst.msk [vmem:[%s4370_s2 + $0x708] sm:$0xff] %vm1835_vm0, %v1832_v16 }

</bundles_post_ra>
